<compile_context>
chip_gen: v6e
topology: v6e:2x2x1
jax: 0.10.0
libtpu: 0.0.40
codegen_flags: <defaults>
</compile_context>

<pallas_src>
import functools

import numpy as np

import jax
import jax.numpy as jnp
from jax.experimental import pallas as pl
from jax.experimental.pallas import tpu as pltpu

EPS = 1e-5
_NT = (((1,), (1,)), ((), ()))   # dot_general: contract last dims of both (A @ B^T)


# ------------------------------ Pallas kernel --------------------------------

def _cgc_kernel(shifts,
                x_ref,               # (Cin, Lp)   input slab (also the residual)
                w1_ref,              # (c, Cin)    conv1 weight * bn1 scale
                b1_ref,              # (c, 1)      bn1 shift
                poolT_ref,           # (9, Lp)     adaptive-avg-pool(3) matrix (transposed)
                cew_ref,             # (nl, 9)     ce linear weight
                ces_ref, ceb_ref,    # (1, c)      ce_bn scale / shift
                gdw_ref,             # (9, nl)     gd linear weight
                ci2s_ref, ci2b_ref,  # (1, c)      ci_bn2 scale / shift
                ciw_ref,             # (oc, c)     ci linear weight (c // g == 1 case)
                cis_ref, cib_ref,    # (oc, 1)     ci_bn scale / shift
                gd2w_ref,            # (9, nl)     gd2 linear weight
                w2_ref,              # (9, oc, c)  conv2 weight [tap, oc, ic] * bn2 scale
                b2_ref,              # (oc, 1)     bn2 shift
                mask_ref,            # (9, Lp)     validity mask per 3x3 tap
                w3_ref,              # (oc3, oc)   conv3 weight * bn3 scale
                b3_ref,              # (oc3, 1)    bn3 shift
                o_ref):              # (oc3, Lp)
    f32 = jnp.float32
    x = x_ref[...]                                                   # (Cin, Lp)

    # ---- conv1 (1x1, bn1 scale folded) + shift + ReLU ------------------------
    h1 = jnp.maximum(
        jnp.dot(w1_ref[...], x, preferred_element_type=f32) + b1_ref[...], 0.0)

    # ---- CGC gating sub-network (tiny; channel-last orientation) -------------
    glT = jax.lax.dot_general(poolT_ref[...], h1, _NT,
                              preferred_element_type=f32)            # (9, c)
    ce2T = jnp.dot(cew_ref[...], glT, preferred_element_type=f32)    # (nl, c)

    # context branch: ce_bn -> relu -> gd    (kept transposed: (9, c))
    tT = jnp.maximum(ce2T * ces_ref[...] + ceb_ref[...], 0.0)
    ctxT = jnp.dot(gdw_ref[...], tT, preferred_element_type=f32)     # (9, c)

    # channel branch: ci_bn2 -> relu -> ci -> ci_bn -> relu -> gd2   ((oc, 9))
    uT = jnp.maximum(ce2T * ci2s_ref[...] + ci2b_ref[...], 0.0)      # (nl, c)
    v = jax.lax.dot_general(ciw_ref[...], uT, _NT,
                            preferred_element_type=f32)              # (oc, nl)
    v = jnp.maximum(v * cis_ref[...] + cib_ref[...], 0.0)
    chg = jax.lax.dot_general(v, gd2w_ref[...], _NT,
                              preferred_element_type=f32)            # (oc, 9)

    # ---- conv2: gated 3x3 conv as 9 shifted matmuls (unfold stays in VMEM) ---
    masks = mask_ref[...]                                            # (9, Lp)
    acc = None
    for k, s in enumerate(shifts):
        gate_k = jax.nn.sigmoid(ctxT[k:k + 1, :] + chg[:, k:k + 1])  # (oc, c)
        w_k = gate_k * w2_ref[k]                                     # (oc, c)
        tap = h1 if s == 0 else pltpu.roll(h1, shift=s, axis=1)
        tap = tap * masks[k:k + 1, :]                                # (c, Lp)
        part = jnp.dot(w_k, tap, preferred_element_type=f32)
        acc = part if acc is None else acc + part
    h2 = jnp.maximum(acc + b2_ref[...], 0.0)                         # (oc, Lp)

    # ---- conv3 (1x1, bn3 scale folded) + residual + ReLU ----------------------
    y = jnp.dot(w3_ref[...], h2, preferred_element_type=f32) + b3_ref[...] + x
    o_ref[...] = jnp.maximum(y, 0.0)


# --------------------------- host-side constant builders ---------------------

def _adaptive_pool3_matrix(H, W, Lp):
    """(9, Lp) matrix P s.t. P contracted with flat h1 == AdaptiveAvgPool2d(3)."""
    P = np.zeros((9, Lp), np.float32)
    for ph in range(3):
        h0, h1 = (ph * H) // 3, -((-(ph + 1) * H) // 3)
        for pw in range(3):
            w0, w1 = (pw * W) // 3, -((-(pw + 1) * W) // 3)
            inv = 1.0 / ((h1 - h0) * (w1 - w0))
            for hh in range(h0, h1):
                for ww in range(w0, w1):
                    P[ph * 3 + pw, hh * W + ww] = inv
    return jnp.asarray(P)


def _tap_masks_and_shifts(H, W, Lp):
    """Per-3x3-tap validity masks (9, Lp) and lane-roll amounts for the unfold."""
    L = H * W
    masks = np.zeros((9, Lp), np.float32)
    shifts = []
    for kh in range(3):
        for kw in range(3):
            dh, dw = kh - 1, kw - 1
            shifts.append((-(dh * W + dw)) % Lp)
            k = kh * 3 + kw
            for l in range(L):
                lh, lw = divmod(l, W)
                if 0 <= lh + dh < H and 0 <= lw + dw < W:
                    masks[k, l] = 1.0
    return jnp.asarray(masks), tuple(shifts)


def _bn_fold(p):
    scale = p["gamma"] * jax.lax.rsqrt(p["var"] + EPS)
    shift = p["beta"] - p["mean"] * scale
    return scale.astype(jnp.float32), shift.astype(jnp.float32)


# ------------------------------ fused forward --------------------------------

@jax.jit
def cgc_bottleneck_forward(x, params):
    B, Cin, H, W = x.shape
    L = H * W
    Lp = ((L + 127) // 128) * 128            # lane-dense padded spatial extent
    planes = params["w1"].shape[0]
    oc3 = params["w3"].shape[0]
    nl = params["ce_w"].shape[0]
    assert Cin == oc3, "no-downsample residual requires inplanes == planes*expansion"
    # TODO(synk): the grouped ci path (in_channels // g > 1, i.e. planes >= 16) and
    # the g <= 3 branch of CConv2d are not implemented; this covers c // g == 1.
    assert params["ci_w"].shape == (planes, planes)

    x_flat = jnp.pad(x.reshape(B, Cin, L).astype(jnp.float32),
                     ((0, 0), (0, 0), (0, Lp - L)))

    # Fold BN scales into conv weights (host-side, tiny, once per call).
    s1, b1 = _bn_fold(params["bn1"])
    s2, b2 = _bn_fold(params["bn2"])
    s3, b3 = _bn_fold(params["bn3"])
    w1s = params["w1"].reshape(planes, Cin) * s1[:, None]
    w3s = params["w3"].reshape(oc3, planes) * s3[:, None]
    w2s = jnp.transpose(params["w2"] * s2[:, None, None, None],
                        (2, 3, 0, 1)).reshape(9, planes, planes)     # [tap, oc, ic]

    ce_s, ce_b = _bn_fold(params["ce_bn"])
    ci2_s, ci2_b = _bn_fold(params["ci_bn2"])
    ci_s, ci_b = _bn_fold(params["ci_bn"])

    poolT = _adaptive_pool3_matrix(H, W, Lp)           # (9, Lp)
    masks, shifts = _tap_masks_and_shifts(H, W, Lp)    # (9, Lp), 9 static ints

    c2 = lambda b: (0, 0)
    c3 = lambda b: (0, 0, 0)

    out = pl.pallas_call(
        functools.partial(_cgc_kernel, shifts),
        out_shape=jax.ShapeDtypeStruct((B, oc3, Lp), jnp.float32),
        grid=(B,),
        in_specs=[
            pl.BlockSpec((None, Cin, Lp), lambda b: (b, 0, 0)),      # x (+ residual)
            pl.BlockSpec((planes, Cin), c2),                         # w1 * s1
            pl.BlockSpec((planes, 1), c2),                           # bn1 shift
            pl.BlockSpec((9, Lp), c2),                               # pool matrix
            pl.BlockSpec((nl, 9), c2),                               # ce
            pl.BlockSpec((1, planes), c2),                           # ce_bn scale
            pl.BlockSpec((1, planes), c2),                           # ce_bn shift
            pl.BlockSpec((9, nl), c2),                               # gd
            pl.BlockSpec((1, planes), c2),                           # ci_bn2 scale
            pl.BlockSpec((1, planes), c2),                           # ci_bn2 shift
            pl.BlockSpec((planes, planes), c2),                      # ci
            pl.BlockSpec((planes, 1), c2),                           # ci_bn scale
            pl.BlockSpec((planes, 1), c2),                           # ci_bn shift
            pl.BlockSpec((9, nl), c2),                               # gd2
            pl.BlockSpec((9, planes, planes), c3),                   # w2 * s2 [tap, oc, ic]
            pl.BlockSpec((planes, 1), c2),                           # bn2 shift
            pl.BlockSpec((9, Lp), c2),                               # tap masks
            pl.BlockSpec((oc3, planes), c2),                         # w3 * s3
            pl.BlockSpec((oc3, 1), c2),                              # bn3 shift
        ],
        out_specs=pl.BlockSpec((None, oc3, Lp), lambda b: (b, 0, 0)),
        compiler_params=pltpu.CompilerParams(
            dimension_semantics=("parallel",)),
    )(x_flat, w1s, b1[:, None], poolT,
      params["ce_w"], ce_s[None, :], ce_b[None, :], params["gd_w"],
      ci2_s[None, :], ci2_b[None, :], params["ci_w"],
      ci_s[:, None], ci_b[:, None], params["gd2_w"],
      w2s, b2[:, None], masks,
      w3s, b3[:, None])

    return out[:, :, :L].reshape(B, oc3, H, W)


# ------------------------- pure-JAX reference (for checking) -----------------

def _bn_apply(y, p, axis):
    scale = p["gamma"] * jax.lax.rsqrt(p["var"] + EPS)
    shift = p["beta"] - p["mean"] * scale
    shape = [1] * y.ndim
    shape[axis] = -1
    return y * scale.reshape(shape) + shift.reshape(shape)


@jax.jit
def _reference_forward(x, params):
    B, Cin, H, W = x.shape
    L = H * W
    planes = params["w1"].shape[0]
    oc3 = params["w3"].shape[0]
    x_flat = x.reshape(B, Cin, L)

    w1 = params["w1"].reshape(planes, Cin)
    h1 = jnp.maximum(_bn_apply(jnp.einsum("oi,bil->bol", w1, x_flat),
                               params["bn1"], 1), 0.0)
    h1_img = h1.reshape(B, planes, H, W)

    gl = h1_img.reshape(B, planes, 3, H // 3, 3, W // 3).mean(axis=(3, 5)).reshape(B, planes, 9)
    ce2 = jnp.einsum("bcn,mn->bcm", gl, params["ce_w"])
    t = jnp.maximum(_bn_apply(ce2, params["ce_bn"], 1), 0.0)
    ctx = jnp.einsum("bcm,km->bck", t, params["gd_w"])

    u = jnp.maximum(_bn_apply(ce2, params["ci_bn2"], 1), 0.0)
    v = jnp.einsum("og,bgm->bom", params["ci_w"], u)
    v = jnp.maximum(_bn_apply(v, params["ci_bn"], 1), 0.0)
    chg = jnp.einsum("bom,km->bok", v, params["gd2_w"])

    gate = jax.nn.sigmoid(ctx[:, None, :, :] + chg[:, :, None, :])          # (B, oc, c, 9)
    gated_w = (gate * params["w2"].reshape(planes, planes, 9)[None]
               ).reshape(B, planes, planes * 9)

    xp = jnp.pad(h1_img, ((0, 0), (0, 0), (1, 1), (1, 1)))
    pat = jnp.stack([xp[:, :, kh:kh + H, kw:kw + W]
                     for kh in range(3) for kw in range(3)], axis=2)
    x_un = pat.reshape(B, planes * 9, L)
    h2 = jnp.maximum(_bn_apply(jnp.einsum("bok,bkl->bol", gated_w, x_un),
                               params["bn2"], 1), 0.0)

    w3 = params["w3"].reshape(oc3, planes)
    out = jnp.maximum(_bn_apply(jnp.einsum("oi,bil->bol", w3, h2),
                                params["bn3"], 1) + x_flat, 0.0)
    return out.reshape(B, oc3, H, W)


# ------------------------------ param init -----------------------------------

def _init_bn(key, c):
    k1, k2, k3, k4 = jax.random.split(key, 4)
    return dict(
        gamma=1.0 + 0.1 * jax.random.normal(k1, (c,), jnp.float32),
        beta=0.1 * jax.random.normal(k2, (c,), jnp.float32),
        mean=0.1 * jax.random.normal(k3, (c,), jnp.float32),
        var=jax.random.uniform(k4, (c,), jnp.float32, 0.5, 1.5),
    )


def init_params(key, inplanes, planes):
    expansion = 4
    num_lat = 3 * 3 // 2 + 1                       # 5
    g = 16 if (planes // 16) else planes           # planes=4 -> g=4
    keys = jax.random.split(key, 16)
    return {
        "w1": 0.1 * jax.random.normal(keys[0], (planes, inplanes, 1, 1), jnp.float32),
        "bn1": _init_bn(keys[1], planes),
        "w2": 0.1 * jax.random.normal(keys[2], (planes, planes, 3, 3), jnp.float32),
        "ce_w": 0.1 * jax.random.normal(keys[3], (num_lat, 9), jnp.float32),
        "ce_bn": _init_bn(keys[4], planes),
        "ci_bn2": _init_bn(keys[5], planes),
        "ci_w": 0.1 * jax.random.normal(keys[6], (planes // (planes // g), g), jnp.float32),
        "ci_bn": _init_bn(keys[7], planes),
        "gd_w": 0.1 * jax.random.normal(keys[8], (9, num_lat), jnp.float32),
        "gd2_w": 0.1 * jax.random.normal(keys[9], (9, num_lat), jnp.float32),
        "bn2": _init_bn(keys[10], planes),
        "w3": 0.1 * jax.random.normal(keys[11], (planes * expansion, planes, 1, 1), jnp.float32),
        "bn3": _init_bn(keys[12], planes * expansion),
    }


# ----------------------------------- main -------------------------------------

if __name__ == "__main__":
    B, inplanes, planes, H, W = 2, 16, 4, 12, 12   # inplanes == planes*expansion -> no downsample
    key = jax.random.PRNGKey(0)
    kp, kx = jax.random.split(key)
    params = init_params(kp, inplanes, planes)
    x = jax.random.normal(kx, (B, inplanes, H, W), jnp.float32)

    out = jax.block_until_ready(cgc_bottleneck_forward(x, params))
    ref = jax.block_until_ready(_reference_forward(x, params))

    assert out.shape == (B, planes * 4, H, W)
    assert bool(jnp.all(jnp.isfinite(out)))
    err = float(jnp.max(jnp.abs(out - ref)))
    assert err < 2e-2, f"max |kernel - reference| = {err}"
    print("KERNEL_OK")
</pallas_src>

<mosaic_0001>
module attributes {stable_mosaic.version = 11 : i64} {
  func.func @_cgc_kernel(%arg0: i32, %arg1: memref<1x16x256xf32, #tpu.memory_space<vmem>>, %arg2: memref<4x16xf32, #tpu.memory_space<vmem>>, %arg3: memref<4x1xf32, #tpu.memory_space<vmem>>, %arg4: memref<9x256xf32, #tpu.memory_space<vmem>>, %arg5: memref<5x9xf32, #tpu.memory_space<vmem>>, %arg6: memref<1x4xf32, #tpu.memory_space<vmem>>, %arg7: memref<1x4xf32, #tpu.memory_space<vmem>>, %arg8: memref<9x5xf32, #tpu.memory_space<vmem>>, %arg9: memref<1x4xf32, #tpu.memory_space<vmem>>, %arg10: memref<1x4xf32, #tpu.memory_space<vmem>>, %arg11: memref<4x4xf32, #tpu.memory_space<vmem>>, %arg12: memref<4x1xf32, #tpu.memory_space<vmem>>, %arg13: memref<4x1xf32, #tpu.memory_space<vmem>>, %arg14: memref<9x5xf32, #tpu.memory_space<vmem>>, %arg15: memref<9x4x4xf32, #tpu.memory_space<vmem>>, %arg16: memref<4x1xf32, #tpu.memory_space<vmem>>, %arg17: memref<9x256xf32, #tpu.memory_space<vmem>>, %arg18: memref<16x4xf32, #tpu.memory_space<vmem>>, %arg19: memref<16x1xf32, #tpu.memory_space<vmem>>, %arg20: memref<1x16x256xf32, #tpu.memory_space<vmem>>) attributes {dimension_semantics = [#tpu.dimension_semantics<parallel>], iteration_bounds = array<i64: 2>, scalar_prefetch = 0 : i64, scratch_operands = 0 : i64, tpu.core_type = #tpu.core_type<tc>, window_params = [{transform_indices = @transform_0, window_bounds = array<i64: 1, 16, 256>}, {pipeline_mode = #tpu.pipeline_mode<synchronous>, transform_indices = @transform_1, window_bounds = array<i64: 4, 16>}, {pipeline_mode = #tpu.pipeline_mode<synchronous>, transform_indices = @transform_2, window_bounds = array<i64: 4, 1>}, {pipeline_mode = #tpu.pipeline_mode<synchronous>, transform_indices = @transform_3, window_bounds = array<i64: 9, 256>}, {pipeline_mode = #tpu.pipeline_mode<synchronous>, transform_indices = @transform_4, window_bounds = array<i64: 5, 9>}, {pipeline_mode = #tpu.pipeline_mode<synchronous>, transform_indices = @transform_5, window_bounds = array<i64: 1, 4>}, {pipeline_mode = #tpu.pipeline_mode<synchronous>, transform_indices = @transform_6, window_bounds = array<i64: 1, 4>}, {pipeline_mode = #tpu.pipeline_mode<synchronous>, transform_indices = @transform_7, window_bounds = array<i64: 9, 5>}, {pipeline_mode = #tpu.pipeline_mode<synchronous>, transform_indices = @transform_8, window_bounds = array<i64: 1, 4>}, {pipeline_mode = #tpu.pipeline_mode<synchronous>, transform_indices = @transform_9, window_bounds = array<i64: 1, 4>}, {pipeline_mode = #tpu.pipeline_mode<synchronous>, transform_indices = @transform_10, window_bounds = array<i64: 4, 4>}, {pipeline_mode = #tpu.pipeline_mode<synchronous>, transform_indices = @transform_11, window_bounds = array<i64: 4, 1>}, {pipeline_mode = #tpu.pipeline_mode<synchronous>, transform_indices = @transform_12, window_bounds = array<i64: 4, 1>}, {pipeline_mode = #tpu.pipeline_mode<synchronous>, transform_indices = @transform_13, window_bounds = array<i64: 9, 5>}, {pipeline_mode = #tpu.pipeline_mode<synchronous>, transform_indices = @transform_14, window_bounds = array<i64: 9, 4, 4>}, {pipeline_mode = #tpu.pipeline_mode<synchronous>, transform_indices = @transform_15, window_bounds = array<i64: 4, 1>}, {pipeline_mode = #tpu.pipeline_mode<synchronous>, transform_indices = @transform_16, window_bounds = array<i64: 9, 256>}, {pipeline_mode = #tpu.pipeline_mode<synchronous>, transform_indices = @transform_17, window_bounds = array<i64: 16, 4>}, {pipeline_mode = #tpu.pipeline_mode<synchronous>, transform_indices = @transform_18, window_bounds = array<i64: 16, 1>}, {transform_indices = @transform_19, window_bounds = array<i64: 1, 16, 256>}]} {
    %c0 = arith.constant 0 : index
    %c0_0 = arith.constant 0 : index
    %c0_1 = arith.constant 0 : index
    %0 = vector.load %arg1[%c0, %c0_0, %c0_1] : memref<1x16x256xf32, #tpu.memory_space<vmem>>, vector<1x16x256xf32>
    %1 = vector.shape_cast %0 : vector<1x16x256xf32> to vector<16x256xf32>
    %c0_2 = arith.constant 0 : index
    %c0_3 = arith.constant 0 : index
    %2 = vector.load %arg2[%c0_2, %c0_3] : memref<4x16xf32, #tpu.memory_space<vmem>>, vector<4x16xf32>
    %cst = arith.constant dense<0.000000e+00> : vector<4x256xf32>
    %3 = tpu.matmul %2, %1, %cst {dimension_numbers = #tpu.dot_dimension_numbers<[1], [0], [0], [1], [0, 0, 1, 1], [], []>} : vector<4x16xf32>, vector<16x256xf32>, vector<4x256xf32> -> vector<4x256xf32>
    %c0_4 = arith.constant 0 : index
    %c0_5 = arith.constant 0 : index
    %4 = vector.load %arg3[%c0_4, %c0_5] : memref<4x1xf32, #tpu.memory_space<vmem>>, vector<4x1xf32>
    %5 = vector.broadcast %4 : vector<4x1xf32> to vector<4x256xf32>
    %6 = arith.addf %3, %5 : vector<4x256xf32>
    %cst_6 = arith.constant 0.000000e+00 : f32
    %7 = vector.broadcast %cst_6 : f32 to vector<4x256xf32>
    %8 = arith.maximumf %6, %7 : vector<4x256xf32>
    %c0_7 = arith.constant 0 : index
    %c0_8 = arith.constant 0 : index
    %9 = vector.load %arg4[%c0_7, %c0_8] : memref<9x256xf32, #tpu.memory_space<vmem>>, vector<9x256xf32>
    %cst_9 = arith.constant dense<0.000000e+00> : vector<9x4xf32>
    %10 = tpu.matmul %9, %8, %cst_9 {dimension_numbers = #tpu.dot_dimension_numbers<[1], [1], [0], [0], [0, 0, 1, 0], [], []>} : vector<9x256xf32>, vector<4x256xf32>, vector<9x4xf32> -> vector<9x4xf32>
    %c0_10 = arith.constant 0 : index
    %c0_11 = arith.constant 0 : index
    %11 = vector.load %arg5[%c0_10, %c0_11] : memref<5x9xf32, #tpu.memory_space<vmem>>, vector<5x9xf32>
    %cst_12 = arith.constant dense<0.000000e+00> : vector<5x4xf32>
    %12 = tpu.matmul %11, %10, %cst_12 {dimension_numbers = #tpu.dot_dimension_numbers<[1], [0], [0], [1], [0, 0, 1, 1], [], []>} : vector<5x9xf32>, vector<9x4xf32>, vector<5x4xf32> -> vector<5x4xf32>
    %c0_13 = arith.constant 0 : index
    %c0_14 = arith.constant 0 : index
    %13 = vector.load %arg6[%c0_13, %c0_14] : memref<1x4xf32, #tpu.memory_space<vmem>>, vector<1x4xf32>
    %14 = vector.broadcast %13 : vector<1x4xf32> to vector<5x4xf32>
    %15 = arith.mulf %12, %14 : vector<5x4xf32>
    %c0_15 = arith.constant 0 : index
    %c0_16 = arith.constant 0 : index
    %16 = vector.load %arg7[%c0_15, %c0_16] : memref<1x4xf32, #tpu.memory_space<vmem>>, vector<1x4xf32>
    %17 = vector.broadcast %16 : vector<1x4xf32> to vector<5x4xf32>
    %18 = arith.addf %15, %17 : vector<5x4xf32>
    %cst_17 = arith.constant 0.000000e+00 : f32
    %19 = vector.broadcast %cst_17 : f32 to vector<5x4xf32>
    %20 = arith.maximumf %18, %19 : vector<5x4xf32>
    %c0_18 = arith.constant 0 : index
    %c0_19 = arith.constant 0 : index
    %21 = vector.load %arg8[%c0_18, %c0_19] : memref<9x5xf32, #tpu.memory_space<vmem>>, vector<9x5xf32>
    %cst_20 = arith.constant dense<0.000000e+00> : vector<9x4xf32>
    %22 = tpu.matmul %21, %20, %cst_20 {dimension_numbers = #tpu.dot_dimension_numbers<[1], [0], [0], [1], [0, 0, 1, 1], [], []>} : vector<9x5xf32>, vector<5x4xf32>, vector<9x4xf32> -> vector<9x4xf32>
    %c0_21 = arith.constant 0 : index
    %c0_22 = arith.constant 0 : index
    %23 = vector.load %arg9[%c0_21, %c0_22] : memref<1x4xf32, #tpu.memory_space<vmem>>, vector<1x4xf32>
    %24 = vector.broadcast %23 : vector<1x4xf32> to vector<5x4xf32>
    %25 = arith.mulf %12, %24 : vector<5x4xf32>
    %c0_23 = arith.constant 0 : index
    %c0_24 = arith.constant 0 : index
    %26 = vector.load %arg10[%c0_23, %c0_24] : memref<1x4xf32, #tpu.memory_space<vmem>>, vector<1x4xf32>
    %27 = vector.broadcast %26 : vector<1x4xf32> to vector<5x4xf32>
    %28 = arith.addf %25, %27 : vector<5x4xf32>
    %cst_25 = arith.constant 0.000000e+00 : f32
    %29 = vector.broadcast %cst_25 : f32 to vector<5x4xf32>
    %30 = arith.maximumf %28, %29 : vector<5x4xf32>
    %c0_26 = arith.constant 0 : index
    %c0_27 = arith.constant 0 : index
    %31 = vector.load %arg11[%c0_26, %c0_27] : memref<4x4xf32, #tpu.memory_space<vmem>>, vector<4x4xf32>
    %cst_28 = arith.constant dense<0.000000e+00> : vector<4x5xf32>
    %32 = tpu.matmul %31, %30, %cst_28 {dimension_numbers = #tpu.dot_dimension_numbers<[1], [1], [0], [0], [0, 0, 1, 0], [], []>} : vector<4x4xf32>, vector<5x4xf32>, vector<4x5xf32> -> vector<4x5xf32>
    %c0_29 = arith.constant 0 : index
    %c0_30 = arith.constant 0 : index
    %33 = vector.load %arg12[%c0_29, %c0_30] : memref<4x1xf32, #tpu.memory_space<vmem>>, vector<4x1xf32>
    %34 = vector.broadcast %33 : vector<4x1xf32> to vector<4x5xf32>
    %35 = arith.mulf %32, %34 : vector<4x5xf32>
    %c0_31 = arith.constant 0 : index
    %c0_32 = arith.constant 0 : index
    %36 = vector.load %arg13[%c0_31, %c0_32] : memref<4x1xf32, #tpu.memory_space<vmem>>, vector<4x1xf32>
    %37 = vector.broadcast %36 : vector<4x1xf32> to vector<4x5xf32>
    %38 = arith.addf %35, %37 : vector<4x5xf32>
    %cst_33 = arith.constant 0.000000e+00 : f32
    %39 = vector.broadcast %cst_33 : f32 to vector<4x5xf32>
    %40 = arith.maximumf %38, %39 : vector<4x5xf32>
    %c0_34 = arith.constant 0 : index
    %c0_35 = arith.constant 0 : index
    %41 = vector.load %arg14[%c0_34, %c0_35] : memref<9x5xf32, #tpu.memory_space<vmem>>, vector<9x5xf32>
    %cst_36 = arith.constant dense<0.000000e+00> : vector<4x9xf32>
    %42 = tpu.matmul %40, %41, %cst_36 {dimension_numbers = #tpu.dot_dimension_numbers<[1], [1], [0], [0], [0, 0, 1, 0], [], []>} : vector<4x5xf32>, vector<9x5xf32>, vector<4x9xf32> -> vector<4x9xf32>
    %c0_37 = arith.constant 0 : index
    %c0_38 = arith.constant 0 : index
    %43 = vector.load %arg17[%c0_37, %c0_38] : memref<9x256xf32, #tpu.memory_space<vmem>>, vector<9x256xf32>
    %44 = vector.extract_strided_slice %22 {offsets = [0, 0], sizes = [1, 4], strides = [1, 1]} : vector<9x4xf32> to vector<1x4xf32>
    %45 = vector.extract_strided_slice %42 {offsets = [0, 0], sizes = [4, 1], strides = [1, 1]} : vector<4x9xf32> to vector<4x1xf32>
    %46 = vector.broadcast %44 : vector<1x4xf32> to vector<4x4xf32>
    %47 = vector.broadcast %45 : vector<4x1xf32> to vector<4x4xf32>
    %48 = arith.addf %46, %47 : vector<4x4xf32>
    %49 = arith.negf %48 : vector<4x4xf32>
    %50 = math.exp %49 : vector<4x4xf32>
    %cst_39 = arith.constant 1.000000e+00 : f32
    %51 = vector.broadcast %cst_39 : f32 to vector<4x4xf32>
    %52 = arith.addf %51, %50 : vector<4x4xf32>
    %53 = arith.divf %51, %52 : vector<4x4xf32>
    %c0_40 = arith.constant 0 : index
    %c0_41 = arith.constant 0 : index
    %c0_42 = arith.constant 0 : index
    %54 = vector.load %arg15[%c0_40, %c0_41, %c0_42] : memref<9x4x4xf32, #tpu.memory_space<vmem>>, vector<1x4x4xf32>
    %55 = vector.shape_cast %54 : vector<1x4x4xf32> to vector<4x4xf32>
    %56 = arith.mulf %53, %55 : vector<4x4xf32>
    %c13_i32 = arith.constant 13 : i32
    %57 = tpu.dynamic_rotate %8 by %c13_i32 dim 1 : vector<4x256xf32>, i32 -> vector<4x256xf32>
    %58 = vector.extract_strided_slice %43 {offsets = [0, 0], sizes = [1, 256], strides = [1, 1]} : vector<9x256xf32> to vector<1x256xf32>
    %59 = vector.broadcast %58 : vector<1x256xf32> to vector<4x256xf32>
    %60 = arith.mulf %57, %59 : vector<4x256xf32>
    %cst_43 = arith.constant dense<0.000000e+00> : vector<4x256xf32>
    %61 = tpu.matmul %56, %60, %cst_43 {dimension_numbers = #tpu.dot_dimension_numbers<[1], [0], [0], [1], [0, 0, 1, 1], [], []>} : vector<4x4xf32>, vector<4x256xf32>, vector<4x256xf32> -> vector<4x256xf32>
    %62 = vector.extract_strided_slice %22 {offsets = [1, 0], sizes = [1, 4], strides = [1, 1]} : vector<9x4xf32> to vector<1x4xf32>
    %63 = vector.extract_strided_slice %42 {offsets = [0, 1], sizes = [4, 1], strides = [1, 1]} : vector<4x9xf32> to vector<4x1xf32>
    %64 = vector.broadcast %62 : vector<1x4xf32> to vector<4x4xf32>
    %65 = vector.broadcast %63 : vector<4x1xf32> to vector<4x4xf32>
    %66 = arith.addf %64, %65 : vector<4x4xf32>
    %67 = arith.negf %66 : vector<4x4xf32>
    %68 = math.exp %67 : vector<4x4xf32>
    %cst_44 = arith.constant 1.000000e+00 : f32
    %69 = vector.broadcast %cst_44 : f32 to vector<4x4xf32>
    %70 = arith.addf %69, %68 : vector<4x4xf32>
    %71 = arith.divf %69, %70 : vector<4x4xf32>
    %c1 = arith.constant 1 : index
    %c0_45 = arith.constant 0 : index
    %c0_46 = arith.constant 0 : index
    %72 = vector.load %arg15[%c1, %c0_45, %c0_46] : memref<9x4x4xf32, #tpu.memory_space<vmem>>, vector<1x4x4xf32>
    %73 = vector.shape_cast %72 : vector<1x4x4xf32> to vector<4x4xf32>
    %74 = arith.mulf %71, %73 : vector<4x4xf32>
    %c12_i32 = arith.constant 12 : i32
    %75 = tpu.dynamic_rotate %8 by %c12_i32 dim 1 : vector<4x256xf32>, i32 -> vector<4x256xf32>
    %76 = vector.extract_strided_slice %43 {offsets = [1, 0], sizes = [1, 256], strides = [1, 1]} : vector<9x256xf32> to vector<1x256xf32>
    %77 = vector.broadcast %76 : vector<1x256xf32> to vector<4x256xf32>
    %78 = arith.mulf %75, %77 : vector<4x256xf32>
    %cst_47 = arith.constant dense<0.000000e+00> : vector<4x256xf32>
    %79 = tpu.matmul %74, %78, %cst_47 {dimension_numbers = #tpu.dot_dimension_numbers<[1], [0], [0], [1], [0, 0, 1, 1], [], []>} : vector<4x4xf32>, vector<4x256xf32>, vector<4x256xf32> -> vector<4x256xf32>
    %80 = arith.addf %61, %79 : vector<4x256xf32>
    %81 = vector.extract_strided_slice %22 {offsets = [2, 0], sizes = [1, 4], strides = [1, 1]} : vector<9x4xf32> to vector<1x4xf32>
    %82 = vector.extract_strided_slice %42 {offsets = [0, 2], sizes = [4, 1], strides = [1, 1]} : vector<4x9xf32> to vector<4x1xf32>
    %83 = vector.broadcast %81 : vector<1x4xf32> to vector<4x4xf32>
    %84 = vector.broadcast %82 : vector<4x1xf32> to vector<4x4xf32>
    %85 = arith.addf %83, %84 : vector<4x4xf32>
    %86 = arith.negf %85 : vector<4x4xf32>
    %87 = math.exp %86 : vector<4x4xf32>
    %cst_48 = arith.constant 1.000000e+00 : f32
    %88 = vector.broadcast %cst_48 : f32 to vector<4x4xf32>
    %89 = arith.addf %88, %87 : vector<4x4xf32>
    %90 = arith.divf %88, %89 : vector<4x4xf32>
    %c2 = arith.constant 2 : index
    %c0_49 = arith.constant 0 : index
    %c0_50 = arith.constant 0 : index
    %91 = vector.load %arg15[%c2, %c0_49, %c0_50] : memref<9x4x4xf32, #tpu.memory_space<vmem>>, vector<1x4x4xf32>
    %92 = vector.shape_cast %91 : vector<1x4x4xf32> to vector<4x4xf32>
    %93 = arith.mulf %90, %92 : vector<4x4xf32>
    %c11_i32 = arith.constant 11 : i32
    %94 = tpu.dynamic_rotate %8 by %c11_i32 dim 1 : vector<4x256xf32>, i32 -> vector<4x256xf32>
    %95 = vector.extract_strided_slice %43 {offsets = [2, 0], sizes = [1, 256], strides = [1, 1]} : vector<9x256xf32> to vector<1x256xf32>
    %96 = vector.broadcast %95 : vector<1x256xf32> to vector<4x256xf32>
    %97 = arith.mulf %94, %96 : vector<4x256xf32>
    %cst_51 = arith.constant dense<0.000000e+00> : vector<4x256xf32>
    %98 = tpu.matmul %93, %97, %cst_51 {dimension_numbers = #tpu.dot_dimension_numbers<[1], [0], [0], [1], [0, 0, 1, 1], [], []>} : vector<4x4xf32>, vector<4x256xf32>, vector<4x256xf32> -> vector<4x256xf32>
    %99 = arith.addf %80, %98 : vector<4x256xf32>
    %100 = vector.extract_strided_slice %22 {offsets = [3, 0], sizes = [1, 4], strides = [1, 1]} : vector<9x4xf32> to vector<1x4xf32>
    %101 = vector.extract_strided_slice %42 {offsets = [0, 3], sizes = [4, 1], strides = [1, 1]} : vector<4x9xf32> to vector<4x1xf32>
    %102 = vector.broadcast %100 : vector<1x4xf32> to vector<4x4xf32>
    %103 = vector.broadcast %101 : vector<4x1xf32> to vector<4x4xf32>
    %104 = arith.addf %102, %103 : vector<4x4xf32>
    %105 = arith.negf %104 : vector<4x4xf32>
    %106 = math.exp %105 : vector<4x4xf32>
    %cst_52 = arith.constant 1.000000e+00 : f32
    %107 = vector.broadcast %cst_52 : f32 to vector<4x4xf32>
    %108 = arith.addf %107, %106 : vector<4x4xf32>
    %109 = arith.divf %107, %108 : vector<4x4xf32>
    %c3 = arith.constant 3 : index
    %c0_53 = arith.constant 0 : index
    %c0_54 = arith.constant 0 : index
    %110 = vector.load %arg15[%c3, %c0_53, %c0_54] : memref<9x4x4xf32, #tpu.memory_space<vmem>>, vector<1x4x4xf32>
    %111 = vector.shape_cast %110 : vector<1x4x4xf32> to vector<4x4xf32>
    %112 = arith.mulf %109, %111 : vector<4x4xf32>
    %c1_i32 = arith.constant 1 : i32
    %113 = tpu.dynamic_rotate %8 by %c1_i32 dim 1 : vector<4x256xf32>, i32 -> vector<4x256xf32>
    %114 = vector.extract_strided_slice %43 {offsets = [3, 0], sizes = [1, 256], strides = [1, 1]} : vector<9x256xf32> to vector<1x256xf32>
    %115 = vector.broadcast %114 : vector<1x256xf32> to vector<4x256xf32>
    %116 = arith.mulf %113, %115 : vector<4x256xf32>
    %cst_55 = arith.constant dense<0.000000e+00> : vector<4x256xf32>
    %117 = tpu.matmul %112, %116, %cst_55 {dimension_numbers = #tpu.dot_dimension_numbers<[1], [0], [0], [1], [0, 0, 1, 1], [], []>} : vector<4x4xf32>, vector<4x256xf32>, vector<4x256xf32> -> vector<4x256xf32>
    %118 = arith.addf %99, %117 : vector<4x256xf32>
    %119 = vector.extract_strided_slice %22 {offsets = [4, 0], sizes = [1, 4], strides = [1, 1]} : vector<9x4xf32> to vector<1x4xf32>
    %120 = vector.extract_strided_slice %42 {offsets = [0, 4], sizes = [4, 1], strides = [1, 1]} : vector<4x9xf32> to vector<4x1xf32>
    %121 = vector.broadcast %119 : vector<1x4xf32> to vector<4x4xf32>
    %122 = vector.broadcast %120 : vector<4x1xf32> to vector<4x4xf32>
    %123 = arith.addf %121, %122 : vector<4x4xf32>
    %124 = arith.negf %123 : vector<4x4xf32>
    %125 = math.exp %124 : vector<4x4xf32>
    %cst_56 = arith.constant 1.000000e+00 : f32
    %126 = vector.broadcast %cst_56 : f32 to vector<4x4xf32>
    %127 = arith.addf %126, %125 : vector<4x4xf32>
    %128 = arith.divf %126, %127 : vector<4x4xf32>
    %c4 = arith.constant 4 : index
    %c0_57 = arith.constant 0 : index
    %c0_58 = arith.constant 0 : index
    %129 = vector.load %arg15[%c4, %c0_57, %c0_58] : memref<9x4x4xf32, #tpu.memory_space<vmem>>, vector<1x4x4xf32>
    %130 = vector.shape_cast %129 : vector<1x4x4xf32> to vector<4x4xf32>
    %131 = arith.mulf %128, %130 : vector<4x4xf32>
    %132 = vector.extract_strided_slice %43 {offsets = [4, 0], sizes = [1, 256], strides = [1, 1]} : vector<9x256xf32> to vector<1x256xf32>
    %133 = vector.broadcast %132 : vector<1x256xf32> to vector<4x256xf32>
    %134 = arith.mulf %8, %133 : vector<4x256xf32>
    %cst_59 = arith.constant dense<0.000000e+00> : vector<4x256xf32>
    %135 = tpu.matmul %131, %134, %cst_59 {dimension_numbers = #tpu.dot_dimension_numbers<[1], [0], [0], [1], [0, 0, 1, 1], [], []>} : vector<4x4xf32>, vector<4x256xf32>, vector<4x256xf32> -> vector<4x256xf32>
    %136 = arith.addf %118, %135 : vector<4x256xf32>
    %137 = vector.extract_strided_slice %22 {offsets = [5, 0], sizes = [1, 4], strides = [1, 1]} : vector<9x4xf32> to vector<1x4xf32>
    %138 = vector.extract_strided_slice %42 {offsets = [0, 5], sizes = [4, 1], strides = [1, 1]} : vector<4x9xf32> to vector<4x1xf32>
    %139 = vector.broadcast %137 : vector<1x4xf32> to vector<4x4xf32>
    %140 = vector.broadcast %138 : vector<4x1xf32> to vector<4x4xf32>
    %141 = arith.addf %139, %140 : vector<4x4xf32>
    %142 = arith.negf %141 : vector<4x4xf32>
    %143 = math.exp %142 : vector<4x4xf32>
    %cst_60 = arith.constant 1.000000e+00 : f32
    %144 = vector.broadcast %cst_60 : f32 to vector<4x4xf32>
    %145 = arith.addf %144, %143 : vector<4x4xf32>
    %146 = arith.divf %144, %145 : vector<4x4xf32>
    %c5 = arith.constant 5 : index
    %c0_61 = arith.constant 0 : index
    %c0_62 = arith.constant 0 : index
    %147 = vector.load %arg15[%c5, %c0_61, %c0_62] : memref<9x4x4xf32, #tpu.memory_space<vmem>>, vector<1x4x4xf32>
    %148 = vector.shape_cast %147 : vector<1x4x4xf32> to vector<4x4xf32>
    %149 = arith.mulf %146, %148 : vector<4x4xf32>
    %c255_i32 = arith.constant 255 : i32
    %150 = tpu.dynamic_rotate %8 by %c255_i32 dim 1 : vector<4x256xf32>, i32 -> vector<4x256xf32>
    %151 = vector.extract_strided_slice %43 {offsets = [5, 0], sizes = [1, 256], strides = [1, 1]} : vector<9x256xf32> to vector<1x256xf32>
    %152 = vector.broadcast %151 : vector<1x256xf32> to vector<4x256xf32>
    %153 = arith.mulf %150, %152 : vector<4x256xf32>
    %cst_63 = arith.constant dense<0.000000e+00> : vector<4x256xf32>
    %154 = tpu.matmul %149, %153, %cst_63 {dimension_numbers = #tpu.dot_dimension_numbers<[1], [0], [0], [1], [0, 0, 1, 1], [], []>} : vector<4x4xf32>, vector<4x256xf32>, vector<4x256xf32> -> vector<4x256xf32>
    %155 = arith.addf %136, %154 : vector<4x256xf32>
    %156 = vector.extract_strided_slice %22 {offsets = [6, 0], sizes = [1, 4], strides = [1, 1]} : vector<9x4xf32> to vector<1x4xf32>
    %157 = vector.extract_strided_slice %42 {offsets = [0, 6], sizes = [4, 1], strides = [1, 1]} : vector<4x9xf32> to vector<4x1xf32>
    %158 = vector.broadcast %156 : vector<1x4xf32> to vector<4x4xf32>
    %159 = vector.broadcast %157 : vector<4x1xf32> to vector<4x4xf32>
    %160 = arith.addf %158, %159 : vector<4x4xf32>
    %161 = arith.negf %160 : vector<4x4xf32>
    %162 = math.exp %161 : vector<4x4xf32>
    %cst_64 = arith.constant 1.000000e+00 : f32
    %163 = vector.broadcast %cst_64 : f32 to vector<4x4xf32>
    %164 = arith.addf %163, %162 : vector<4x4xf32>
    %165 = arith.divf %163, %164 : vector<4x4xf32>
    %c6 = arith.constant 6 : index
    %c0_65 = arith.constant 0 : index
    %c0_66 = arith.constant 0 : index
    %166 = vector.load %arg15[%c6, %c0_65, %c0_66] : memref<9x4x4xf32, #tpu.memory_space<vmem>>, vector<1x4x4xf32>
    %167 = vector.shape_cast %166 : vector<1x4x4xf32> to vector<4x4xf32>
    %168 = arith.mulf %165, %167 : vector<4x4xf32>
    %c245_i32 = arith.constant 245 : i32
    %169 = tpu.dynamic_rotate %8 by %c245_i32 dim 1 : vector<4x256xf32>, i32 -> vector<4x256xf32>
    %170 = vector.extract_strided_slice %43 {offsets = [6, 0], sizes = [1, 256], strides = [1, 1]} : vector<9x256xf32> to vector<1x256xf32>
    %171 = vector.broadcast %170 : vector<1x256xf32> to vector<4x256xf32>
    %172 = arith.mulf %169, %171 : vector<4x256xf32>
    %cst_67 = arith.constant dense<0.000000e+00> : vector<4x256xf32>
    %173 = tpu.matmul %168, %172, %cst_67 {dimension_numbers = #tpu.dot_dimension_numbers<[1], [0], [0], [1], [0, 0, 1, 1], [], []>} : vector<4x4xf32>, vector<4x256xf32>, vector<4x256xf32> -> vector<4x256xf32>
    %174 = arith.addf %155, %173 : vector<4x256xf32>
    %175 = vector.extract_strided_slice %22 {offsets = [7, 0], sizes = [1, 4], strides = [1, 1]} : vector<9x4xf32> to vector<1x4xf32>
    %176 = vector.extract_strided_slice %42 {offsets = [0, 7], sizes = [4, 1], strides = [1, 1]} : vector<4x9xf32> to vector<4x1xf32>
    %177 = vector.broadcast %175 : vector<1x4xf32> to vector<4x4xf32>
    %178 = vector.broadcast %176 : vector<4x1xf32> to vector<4x4xf32>
    %179 = arith.addf %177, %178 : vector<4x4xf32>
    %180 = arith.negf %179 : vector<4x4xf32>
    %181 = math.exp %180 : vector<4x4xf32>
    %cst_68 = arith.constant 1.000000e+00 : f32
    %182 = vector.broadcast %cst_68 : f32 to vector<4x4xf32>
    %183 = arith.addf %182, %181 : vector<4x4xf32>
    %184 = arith.divf %182, %183 : vector<4x4xf32>
    %c7 = arith.constant 7 : index
    %c0_69 = arith.constant 0 : index
    %c0_70 = arith.constant 0 : index
    %185 = vector.load %arg15[%c7, %c0_69, %c0_70] : memref<9x4x4xf32, #tpu.memory_space<vmem>>, vector<1x4x4xf32>
    %186 = vector.shape_cast %185 : vector<1x4x4xf32> to vector<4x4xf32>
    %187 = arith.mulf %184, %186 : vector<4x4xf32>
    %c244_i32 = arith.constant 244 : i32
    %188 = tpu.dynamic_rotate %8 by %c244_i32 dim 1 : vector<4x256xf32>, i32 -> vector<4x256xf32>
    %189 = vector.extract_strided_slice %43 {offsets = [7, 0], sizes = [1, 256], strides = [1, 1]} : vector<9x256xf32> to vector<1x256xf32>
    %190 = vector.broadcast %189 : vector<1x256xf32> to vector<4x256xf32>
    %191 = arith.mulf %188, %190 : vector<4x256xf32>
    %cst_71 = arith.constant dense<0.000000e+00> : vector<4x256xf32>
    %192 = tpu.matmul %187, %191, %cst_71 {dimension_numbers = #tpu.dot_dimension_numbers<[1], [0], [0], [1], [0, 0, 1, 1], [], []>} : vector<4x4xf32>, vector<4x256xf32>, vector<4x256xf32> -> vector<4x256xf32>
    %193 = arith.addf %174, %192 : vector<4x256xf32>
    %194 = vector.extract_strided_slice %22 {offsets = [8, 0], sizes = [1, 4], strides = [1, 1]} : vector<9x4xf32> to vector<1x4xf32>
    %195 = vector.extract_strided_slice %42 {offsets = [0, 8], sizes = [4, 1], strides = [1, 1]} : vector<4x9xf32> to vector<4x1xf32>
    %196 = vector.broadcast %194 : vector<1x4xf32> to vector<4x4xf32>
    %197 = vector.broadcast %195 : vector<4x1xf32> to vector<4x4xf32>
    %198 = arith.addf %196, %197 : vector<4x4xf32>
    %199 = arith.negf %198 : vector<4x4xf32>
    %200 = math.exp %199 : vector<4x4xf32>
    %cst_72 = arith.constant 1.000000e+00 : f32
    %201 = vector.broadcast %cst_72 : f32 to vector<4x4xf32>
    %202 = arith.addf %201, %200 : vector<4x4xf32>
    %203 = arith.divf %201, %202 : vector<4x4xf32>
    %c8 = arith.constant 8 : index
    %c0_73 = arith.constant 0 : index
    %c0_74 = arith.constant 0 : index
    %204 = vector.load %arg15[%c8, %c0_73, %c0_74] : memref<9x4x4xf32, #tpu.memory_space<vmem>>, vector<1x4x4xf32>
    %205 = vector.shape_cast %204 : vector<1x4x4xf32> to vector<4x4xf32>
    %206 = arith.mulf %203, %205 : vector<4x4xf32>
    %c243_i32 = arith.constant 243 : i32
    %207 = tpu.dynamic_rotate %8 by %c243_i32 dim 1 : vector<4x256xf32>, i32 -> vector<4x256xf32>
    %208 = vector.extract_strided_slice %43 {offsets = [8, 0], sizes = [1, 256], strides = [1, 1]} : vector<9x256xf32> to vector<1x256xf32>
    %209 = vector.broadcast %208 : vector<1x256xf32> to vector<4x256xf32>
    %210 = arith.mulf %207, %209 : vector<4x256xf32>
    %cst_75 = arith.constant dense<0.000000e+00> : vector<4x256xf32>
    %211 = tpu.matmul %206, %210, %cst_75 {dimension_numbers = #tpu.dot_dimension_numbers<[1], [0], [0], [1], [0, 0, 1, 1], [], []>} : vector<4x4xf32>, vector<4x256xf32>, vector<4x256xf32> -> vector<4x256xf32>
    %212 = arith.addf %193, %211 : vector<4x256xf32>
    %c0_76 = arith.constant 0 : index
    %c0_77 = arith.constant 0 : index
    %213 = vector.load %arg16[%c0_76, %c0_77] : memref<4x1xf32, #tpu.memory_space<vmem>>, vector<4x1xf32>
    %214 = vector.broadcast %213 : vector<4x1xf32> to vector<4x256xf32>
    %215 = arith.addf %212, %214 : vector<4x256xf32>
    %cst_78 = arith.constant 0.000000e+00 : f32
    %216 = vector.broadcast %cst_78 : f32 to vector<4x256xf32>
    %217 = arith.maximumf %215, %216 : vector<4x256xf32>
    %c0_79 = arith.constant 0 : index
    %c0_80 = arith.constant 0 : index
    %218 = vector.load %arg18[%c0_79, %c0_80] : memref<16x4xf32, #tpu.memory_space<vmem>>, vector<16x4xf32>
    %cst_81 = arith.constant dense<0.000000e+00> : vector<16x256xf32>
    %219 = tpu.matmul %218, %217, %cst_81 {dimension_numbers = #tpu.dot_dimension_numbers<[1], [0], [0], [1], [0, 0, 1, 1], [], []>} : vector<16x4xf32>, vector<4x256xf32>, vector<16x256xf32> -> vector<16x256xf32>
    %c0_82 = arith.constant 0 : index
    %c0_83 = arith.constant 0 : index
    %220 = vector.load %arg19[%c0_82, %c0_83] : memref<16x1xf32, #tpu.memory_space<vmem>>, vector<16x1xf32>
    %221 = vector.broadcast %220 : vector<16x1xf32> to vector<16x256xf32>
    %222 = arith.addf %219, %221 : vector<16x256xf32>
    %223 = arith.addf %222, %1 : vector<16x256xf32>
    %cst_84 = arith.constant 0.000000e+00 : f32
    %224 = vector.broadcast %cst_84 : f32 to vector<16x256xf32>
    %225 = arith.maximumf %223, %224 : vector<16x256xf32>
    %c0_85 = arith.constant 0 : index
    %c0_86 = arith.constant 0 : index
    %c0_87 = arith.constant 0 : index
    %226 = vector.load %arg20[%c0_85, %c0_86, %c0_87] : memref<1x16x256xf32, #tpu.memory_space<vmem>>, vector<1x16x256xf32>
    %227 = vector.shape_cast %226 : vector<1x16x256xf32> to vector<16x256xf32>
    %228 = vector.shape_cast %225 : vector<16x256xf32> to vector<1x16x256xf32>
    tpu.vector_store %arg20[%c0_85, %c0_86, %c0_87], %228 {strides = array<i32>} : memref<1x16x256xf32, #tpu.memory_space<vmem>>, vector<1x16x256xf32>,
    return
  }
  func.func @transform_0(%arg0: i32) -> (i32, i32, i32) {
    %c0_i32 = arith.constant 0 : i32
    %c0_i32_0 = arith.constant 0 : i32
    %c0_i32_1 = arith.constant 0 : i32
    return %arg0, %c0_i32, %c0_i32_0 : i32, i32, i32
  }
  func.func @transform_1(%arg0: i32) -> (i32, i32) {
    %c0_i32 = arith.constant 0 : i32
    %c0_i32_0 = arith.constant 0 : i32
    %c0_i32_1 = arith.constant 0 : i32
    return %c0_i32, %c0_i32_0 : i32, i32
  }
  func.func @transform_2(%arg0: i32) -> (i32, i32) {
    %c0_i32 = arith.constant 0 : i32
    %c0_i32_0 = arith.constant 0 : i32
    %c0_i32_1 = arith.constant 0 : i32
    return %c0_i32, %c0_i32_0 : i32, i32
  }
  func.func @transform_3(%arg0: i32) -> (i32, i32) {
    %c0_i32 = arith.constant 0 : i32
    %c0_i32_0 = arith.constant 0 : i32
    %c0_i32_1 = arith.constant 0 : i32
    return %c0_i32, %c0_i32_0 : i32, i32
  }
  func.func @transform_4(%arg0: i32) -> (i32, i32) {
    %c0_i32 = arith.constant 0 : i32
    %c0_i32_0 = arith.constant 0 : i32
    %c0_i32_1 = arith.constant 0 : i32
    return %c0_i32, %c0_i32_0 : i32, i32
  }
  func.func @transform_5(%arg0: i32) -> (i32, i32) {
    %c0_i32 = arith.constant 0 : i32
    %c0_i32_0 = arith.constant 0 : i32
    %c0_i32_1 = arith.constant 0 : i32
    return %c0_i32, %c0_i32_0 : i32, i32
  }
  func.func @transform_6(%arg0: i32) -> (i32, i32) {
    %c0_i32 = arith.constant 0 : i32
    %c0_i32_0 = arith.constant 0 : i32
    %c0_i32_1 = arith.constant 0 : i32
    return %c0_i32, %c0_i32_0 : i32, i32
  }
  func.func @transform_7(%arg0: i32) -> (i32, i32) {
    %c0_i32 = arith.constant 0 : i32
    %c0_i32_0 = arith.constant 0 : i32
    %c0_i32_1 = arith.constant 0 : i32
    return %c0_i32, %c0_i32_0 : i32, i32
  }
  func.func @transform_8(%arg0: i32) -> (i32, i32) {
    %c0_i32 = arith.constant 0 : i32
    %c0_i32_0 = arith.constant 0 : i32
    %c0_i32_1 = arith.constant 0 : i32
    return %c0_i32, %c0_i32_0 : i32, i32
  }
  func.func @transform_9(%arg0: i32) -> (i32, i32) {
    %c0_i32 = arith.constant 0 : i32
    %c0_i32_0 = arith.constant 0 : i32
    %c0_i32_1 = arith.constant 0 : i32
    return %c0_i32, %c0_i32_0 : i32, i32
  }
  func.func @transform_10(%arg0: i32) -> (i32, i32) {
    %c0_i32 = arith.constant 0 : i32
    %c0_i32_0 = arith.constant 0 : i32
    %c0_i32_1 = arith.constant 0 : i32
    return %c0_i32, %c0_i32_0 : i32, i32
  }
  func.func @transform_11(%arg0: i32) -> (i32, i32) {
    %c0_i32 = arith.constant 0 : i32
    %c0_i32_0 = arith.constant 0 : i32
    %c0_i32_1 = arith.constant 0 : i32
    return %c0_i32, %c0_i32_0 : i32, i32
  }
  func.func @transform_12(%arg0: i32) -> (i32, i32) {
    %c0_i32 = arith.constant 0 : i32
    %c0_i32_0 = arith.constant 0 : i32
    %c0_i32_1 = arith.constant 0 : i32
    return %c0_i32, %c0_i32_0 : i32, i32
  }
  func.func @transform_13(%arg0: i32) -> (i32, i32) {
    %c0_i32 = arith.constant 0 : i32
    %c0_i32_0 = arith.constant 0 : i32
    %c0_i32_1 = arith.constant 0 : i32
    return %c0_i32, %c0_i32_0 : i32, i32
  }
  func.func @transform_14(%arg0: i32) -> (i32, i32, i32) {
    %c0_i32 = arith.constant 0 : i32
    %c0_i32_0 = arith.constant 0 : i32
    %c0_i32_1 = arith.constant 0 : i32
    %c0_i32_2 = arith.constant 0 : i32
    return %c0_i32, %c0_i32_0, %c0_i32_1 : i32, i32, i32
  }
  func.func @transform_15(%arg0: i32) -> (i32, i32) {
    %c0_i32 = arith.constant 0 : i32
    %c0_i32_0 = arith.constant 0 : i32
    %c0_i32_1 = arith.constant 0 : i32
    return %c0_i32, %c0_i32_0 : i32, i32
  }
  func.func @transform_16(%arg0: i32) -> (i32, i32) {
    %c0_i32 = arith.constant 0 : i32
    %c0_i32_0 = arith.constant 0 : i32
    %c0_i32_1 = arith.constant 0 : i32
    return %c0_i32, %c0_i32_0 : i32, i32
  }
  func.func @transform_17(%arg0: i32) -> (i32, i32) {
    %c0_i32 = arith.constant 0 : i32
    %c0_i32_0 = arith.constant 0 : i32
    %c0_i32_1 = arith.constant 0 : i32
    return %c0_i32, %c0_i32_0 : i32, i32
  }
  func.func @transform_18(%arg0: i32) -> (i32, i32) {
    %c0_i32 = arith.constant 0 : i32
    %c0_i32_0 = arith.constant 0 : i32
    %c0_i32_1 = arith.constant 0 : i32
    return %c0_i32, %c0_i32_0 : i32, i32
  }
  func.func @transform_19(%arg0: i32) -> (i32, i32, i32) {
    %c0_i32 = arith.constant 0 : i32
    %c0_i32_0 = arith.constant 0 : i32
    %c0_i32_1 = arith.constant 0 : i32
    return %arg0, %c0_i32, %c0_i32_0 : i32, i32, i32
  }
}

</mosaic_0001>

<bundles_post_ra>
// kernel: cgc_bottleneck_forward.1
= control target key start
LH: loop header
LB: loop body
LE: loop exit
PB: predicated region body
PF: predicated region fallthrough
CT: control target
= control target key end

     0   :  { %s3026_s0 = inlined_call_operand.vmem [shape: f32[2,16,256], index: 0, kind: input, shape index: {}]   ;;  %s3027_s1 = inlined_call_operand.vmem [shape: f32[4,16], index: 1, kind: input, shape index: {}]   ;;  %s3028_s2 = inlined_call_operand.vmem [shape: f32[4,1], index: 2, kind: input, shape index: {}]   ;;  %s3029_s3 = inlined_call_operand.vmem [shape: f32[9,256], index: 3, kind: input, shape index: {}]   ;;  %s3030_s4 = inlined_call_operand.vmem [shape: f32[5,9], index: 4, kind: input, shape index: {}]   ;;  %s3031_s5 = inlined_call_operand.vmem [shape: f32[1,4], index: 5, kind: input, shape index: {}]   ;;  %s3032_s6 = inlined_call_operand.vmem [shape: f32[1,4], index: 6, kind: input, shape index: {}]   ;;  %s3033_s7 = inlined_call_operand.vmem [shape: f32[9,5], index: 7, kind: input, shape index: {}]   ;;  %s3034_s8 = inlined_call_operand.vmem [shape: f32[1,4], index: 8, kind: input, shape index: {}]   ;;  %s3035_s9 = inlined_call_operand.vmem [shape: f32[1,4], index: 9, kind: input, shape index: {}]   ;;  %s3036_s10 = inlined_call_operand.vmem [shape: f32[4,4], index: 10, kind: input, shape index: {}]   ;;  %s3037_s11 = inlined_call_operand.vmem [shape: f32[4,1], index: 11, kind: input, shape index: {}]   ;;  %s3038_s12 = inlined_call_operand.vmem [shape: f32[4,1], index: 12, kind: input, shape index: {}]   ;;  %s3039_s13 = inlined_call_operand.vmem [shape: f32[9,5], index: 13, kind: input, shape index: {}]   ;;  %s3040_s14 = inlined_call_operand.vmem [shape: f32[9,4,4], index: 14, kind: input, shape index: {}]   ;;  %s3041_s15 = inlined_call_operand.vmem [shape: f32[4,1], index: 15, kind: input, shape index: {}]   ;;  %s3042_s16 = inlined_call_operand.vmem [shape: f32[9,256], index: 16, kind: input, shape index: {}]   ;;  %s3043_s17 = inlined_call_operand.vmem [shape: f32[16,4], index: 17, kind: input, shape index: {}]   ;;  %s3044_s18 = inlined_call_operand.vmem [shape: f32[16,1], index: 18, kind: input, shape index: {}]   ;;  %s3045_s19 = inlined_call_operand.vmem [shape: f32[2,16,256], index: 19, kind: output, shape index: {}]  }
   0x1   :  { %3047 = sst [smem:[#allocation2_spill]] %s3026_s0  ;;  %s2689_s0 = smov 0  }
   0x2   :  { %3048 = sst [smem:[#allocation3_spill]] %s3027_s1 }
   0x3   :  { %3049 = sst [smem:[#allocation4_spill]] %s3028_s2 }
   0x4   :  { %3050 = sst [smem:[#allocation5_spill]] %s3029_s3 }
   0x5 LB: > { %s2374_s30 = sadd.s32 4294967295, %s2568_s0   ;;  %p2378_p0 = scmp.ge.s32.totalorder %s2568_s0, 1  ;;  %s2568_s0 = sphi %s2689_s0, %s29_s0  }
   0x6   : > { %p537_p1 = scmp.lt.s32.totalorder %s2568_s0, 3 }
   0x8   : > { %p538_p2 = pnand %p2378_p0, %p537_p1 }
   0x9   : > { %p593_p3 = scmp.lt.s32.totalorder (!%p538_p2), %s2374_s30, 1  ;;  %s3051_s1 = sld [smem:[#allocation4_spill]] (!%p538_p2) }
   0xa   : > { %541 = sbr.rel (%p538_p2) target bundleno = 1615 (0x64f), region = 96  ;;  %s3052_s3 = sld [smem:[#allocation2_spill]] (!%p538_p2) }
   0xb   : > { %s3053_s29 = sld [smem:[#allocation3_spill]] (!%p538_p2)  ;;  %s2578_s27 = smov (!%p538_p2), 12  }
   0xc   : > { %s2580_s28 = smov (!%p538_p2), 13   ;;  %s2584_s20 = smov (!%p538_p2), 1  }
   0xd   : > { %s2585_s21 = smov (!%p538_p2), 127   ;;  %s2586_s22 = smov (!%p538_p2), 117  }
   0xe   : > { %s2587_s2 = smov (!%p538_p2), 116   ;;  %s2588_s24 = smov (!%p538_p2), 115  }
   0xf   : > { %v2570_v0 = vmov 0.0   ;;  %v2571_v1 = vmov 0   ;;  %v608_v2 = vld [vmem:[%s3051_s1] sm:$0xf]  ;;  %s3056_s30 = smov (!%p593_p3, %s2374_s30), 1  ;;  %vm614_vm0 = vcmask 130048   ;;  %v1149_v63 = vlaneseq }
  0x10   : > { %682 = vmatprep.mubr.f32.mxu0 %v2570_v0  ;;  %2514 = vset.pattern.permute.xlu0 %v2571_v1  ;;  %v1049_v3 = vld [vmem:[%s3037_s11] sm:$0xf]  ;;  %s2450_s23 = sshll.u32 %s3056_s30, 5  ;;  %s3054_s1 = sld [smem:[#allocation5_spill]]  ;;  %vm2572_vm1 = vmmov 0   ;;  %vm775_vm2 = vcmask 1040384  }
  0x11   : > { %611 = vperm.xlu0 %2514, %v608_v2   ;;  %2515 = vset.pattern.permute.xlu1 %v2571_v1  ;;  %s597_s26 = scalar_lea.vmem %s3052_s3, %s2450_s23  ;;  %v607_v8 = vld [vmem:[%s3053_s29] sm:$0xf]  ;;  %vm771_vm3 = vcmask 72704   ;;  %vm868_vm4 = vcmask 39936   ;;  %vm875_vm5 = vcmask 1044480   ;;  %vm972_vm6 = vcmask 31744  }
  0x12   : > { %v2714_v4 = vld [vmem:[%s597_s26 + $0x18] sm:$0xff]  ;;  %v2716_v5 = vld [vmem:[%s597_s26 + $0x10] sm:$0xff]  ;;  %v2718_v6 = vld [vmem:[%s597_s26 + $0x8] sm:$0xff]  ;;  %v2573_v43 = vmov 1   ;;  %v2574_v55 = vmov 3   ;;  %v2575_v56 = vmov 2  }
  0x13   : > { %646 = vmatprep.subr.mxu0 %v2714_v4  ;;  %v2721_v7 = vld [vmem:[%s597_s26] sm:$0xff]  ;;  %v867_v39 = vld [vmem:[%s3033_s7 + $0x8] sm:$0x1]  ;;  %v2576_v57 = vmov 6   ;;  %v2577_v58 = vmov 4   ;;  %v2579_v59 = vmov 5  }
  0x14   : > { %647 = vmatpush1.msra.mxu0 %v2716_v5  ;;  %v770_v23 = vld [vmem:[%s3030_s4] sm:$0x1f]  ;;  %v1065_v41 = vld [vmem:[%s3039_s13 + $0x8] sm:$0x1]  ;;  %v2581_v60 = vmov 7   ;;  %s2582_s29 = smov 11  }
  0x15   : > { %1052 = vperm.xlu0 %2514, %v1049_v3   ;;  %648 = vmatprep.subr.mxu0 %v2718_v6  ;;  %v1056_v25 = vld [vmem:[%s3038_s12] sm:$0xf]  ;;  %v2583_v61 = vmov 8   ;;  %vm1224_vm8 = vcmask 1043456  }
  0x16   : > { %649 = vmatpush1.msra.mxu0 %v2721_v7  ;;  %v692_v9 = vld [vmem:[%s3054_s1 + $0x8] sm:$0xff]  ;;  %v691_v17 = vld [vmem:[%s3054_s1] sm:$0xff]  ;;  %v694_v18 = vld [vmem:[%s3054_s1 + $0x18] sm:$0x1]  ;;  %1059 = vperm.xlu1 %2515, %v1056_v25  }
  0x17   : > { %2383 = vmatmul.mubr.msk.f32.vlgmr.msra.gmra.mxu0 %vm614_vm0, %v607_v8  ;;  %2463 = vmatprep.subr.mxu0 %v2570_v0  ;;  %v693_v19 = vld [vmem:[%s3054_s1 + $0x10] sm:$0x1]  ;;  %v866_v26 = vld [vmem:[%s3033_s7] sm:$0xff] }
  0x18   : > { %759 = vmatprep.mubr.f32.mxu1 %v692_v9  ;;  %2467 = vmatprep.mubr.msk.f32.mxu0 %vm2572_vm1, %v2570_v0  ;;  %v2386_v27 = vld [vmem:[%s3031_s5] ss:$0 sm:$0xff] }
  0x19   : > { %v2391_v28 = vld [vmem:[%s3034_s8] ss:$0 sm:$0xff] }
  0x1a   : > { %v2387_v30 = vld [vmem:[%s3032_s6] ss:$0 sm:$0xff]  ;;  %2516 = vset.pattern.permute.xlu1 %v2573_v43 }
  0x1b   : > { %v2392_v31 = vld [vmem:[%s3035_s9] ss:$0 sm:$0xff] }
  0x1c   : > { %v971_v40 = vld [vmem:[%s3036_s10] sm:$0xf] }
  0x1d   : > { %v1064_v42 = vld [vmem:[%s3039_s13] sm:$0xff] }
  0x1e   : > { %v2194_v62 = vld [vmem:[%s3041_s15] sm:$0xf] }
  0x8c   : > { %v612_v11 = vpop.permute.xlu0 %611 }
  0x90   : > { %v1053_v44 = vpop.permute.xlu0 %1052 }
  0x91   : > { %v1060_v46 = vpop.permute.xlu1 %1059 }
  0xd7   : > { %v684_v10 = vpop.f32.mrf.mxu0 }
  0xd8   : > { %v685_v12 = vadd.f32 %v684_v10, %v612_v11 }
  0xd9   : > { %v686_v13 = vpop.f32.mrf.mxu0 }
  0xda   : > { %v687_v14 = vadd.f32 %v686_v13, %v612_v11  ;;  %v2735_v16 = vmax.f32 %v685_v12, 0.0 }
  0xdc   : > { %v2733_v15 = vmax.f32 %v687_v14, 0.0 }
  0xde   : > { %725 = vmatprep.subr.mxu1 %v2733_v15 }
  0xdf   : > { %726 = vmatpush1.xpose.msra.mxu1 %v2735_v16 }
  0xe0   : > { %2475 = vmatprep.subr.mxu1 %v2570_v0 }
  0xe2   : > { %760 = vmatmul.mubr.f32.vlgmr.msra.gmra.mxu1 %v691_v17 }
  0xe3   : > { %764 = vmatprep.mubr.f32.mxu1 %v694_v18 }
  0xe6   : > { %765 = vmatmul.mubr.f32.gmra.mxu1 %v693_v19 }
  0xe7   : > { %2477 = vmatprep.mubr.msk.f32.mxu1 %vm2572_vm1, %v2570_v0 }
 0x1a2   : > { %v761_v20 = vpop.f32.mrf.mxu1 }
 0x1a4   : > { %v763_v21 = vpop.f32.mrf.mxu1 }
 0x1a6   : > { %v766_v22 = vpop.f32.mrf.mxu1 }
 0x1a7   : > { %2464 = vmatpush3.msk.msra.mxu0 %vm775_vm2, %v766_v22 }
 0x1a8   : > { %v768_v24 = vpop.f32.mrf.mxu1  ;;  %2465 = vmatprep.subr.mxu0 %v2570_v0 }
 0x1a9   : > { %2466 = vmatpush3.msra.mxu0 %v761_v20 }
 0x1aa   : > { %2468 = vmatmul.mubr.msk.f32.vlgmr.msra.gmra.mxu0 %vm771_vm3, %v770_v23 }
 0x1ab   : > { %2472 = vmatprep.mubr.msk.f32.mxu0 %vm868_vm4, %v866_v26 }
 0x26a   : > { %v845_v29 = vpop.f32.mrf.mxu0 }
 0x26b   : > { %v856_v32 = vmul.f32 %v2386_v27, %v845_v29  ;;  %v961_v33 = vmul.f32 %v2391_v28, %v845_v29 }
 0x26c   : > { %v2469_v34 = vpop.f32.mrf.mxu0 }
 0x26d   : > { %v864_v35 = vadd.f32 %v2387_v30, %v856_v32  ;;  %v969_v36 = vadd.f32 %v2392_v31, %v961_v33 }
 0x26f   : > { %v865_v37 = vmax.f32 %v864_v35, 0.0  ;;  %v970_v38 = vmax.f32 %v969_v36, 0.0 }
 0x271   : > { %2470 = vmatprep.subr.msk.mxu0 %vm875_vm5, %v865_v37  ;;  %2476 = vmatpush3.xpose.msk.msra.mxu1 %vm972_vm6, %v970_v38 }
 0x272   : > { %2471 = vmatpush3.msk.msra.mxu0 %vm875_vm5, %v865_v37 }
 0x273   : > { %2480 = vmatprep.subr.mxu0 %v2570_v0  ;;  %2473 = vmatmul.mubr.msk.f32.vlgmr.msra.gmra.mxu0 %vm868_vm4, %v867_v39 }
 0x274   : > { %2478 = vmatmul.mubr.msk.f32.vlgmr.msra.gmra.mxu1 %vm972_vm6, %v971_v40  ;;  %2484 = vmatprep.mubr.msk.f32.mxu0 %vm2572_vm1, %v2570_v0 }
 0x275   : > { %1295 = vmatprep.mubr.f32.mxu1 %v2570_v0  ;;  %2481 = vmatpush3.xpose.msk.msra.mxu0 %vm868_vm4, %v1065_v41 }
 0x276   : > { %2482 = vmatprep.subr.mxu0 %v2570_v0 }
 0x279   : > { %2483 = vmatpush3.xpose.msk.msra.mxu0 %vm868_vm4, %v1064_v42 }
 0x333   : > { %v2800_v51 = vpop.f32.mrf.mxu0 }
 0x334   : > { %v1045_v45 = vpop.f32.mrf.mxu1 }
 0x335   : > { %v1055_v47 = vmul.f32 %v1053_v44, %v1045_v45  ;;  %v2802_v52 = vpop.f32.mrf.mxu0 }
 0x336   : > { %v2479_v48 = vpop.f32.mrf.mxu1 }
 0x337   : > { %v1062_v49 = vadd.f32 %v1060_v46, %v1055_v47 }
 0x339   : > { %v1063_v50 = vmax.f32 %v1062_v49, 0.0 }
 0x33b   : > { %2485 = vmatmul.mubr.msk.f32.vlgmr.msra.gmra.mxu0 %vm868_vm4, %v1063_v50 }
 0x33c   : > { %1490 = vmatprep.mubr.f32.mxu0 %v2570_v0 }
 0x3fb   : > { %v1141_v53 = vpop.f32.mrf.mxu0 }
 0x3fc   : > { %1155 = vperm.xlu0 %2514, %v1141_v53   ;;  %1191 = vperm.xlu1 %2516, %v1141_v53  }
 0x3fd   : > { %v2486_v54 = vpop.f32.mrf.mxu0 }
 0x400   : > { %2518 = vset.pattern.permute.xlu0 %v2574_v55  ;;  %2517 = vset.pattern.permute.xlu1 %v2575_v56 }
 0x401   : > { %1504 = vperm.xlu0 %2518, %v1141_v53   ;;  %1387 = vperm.xlu1 %2517, %v1141_v53  }
 0x405   : > { %2521 = vset.pattern.permute.xlu0 %v2576_v57  ;;  %2519 = vset.pattern.permute.xlu1 %v2577_v58  ;;  %v2857_v57 = vand.u32 127, %v1149_v63 }
 0x406   : > { %1848 = vperm.xlu0 %2521, %v1141_v53   ;;  %1621 = vperm.xlu1 %2519, %v1141_v53  }
 0x407   : > { %vm1208_vm7 = vcmp.lt.s32.totalorder %v2857_v57, 12  ;;  %vm1173_vm9 = vcmp.lt.s32.totalorder %v2857_v57, 13  ;;  %vm1404_vm10 = vcmp.lt.s32.totalorder %v2857_v57, 11  ;;  %vm1521_vm11 = vcmp.lt.s32.totalorder %v2857_v57, 1 }
 0x408   : > { %vm1748_vm12 = vcmp.lt.s32.totalorder %v2857_v57, 127  ;;  %vm1865_vm13 = vcmp.lt.s32.totalorder %v2857_v57, 117  ;;  %vm1982_vm14 = vcmp.lt.s32.totalorder %v2857_v57, 116  ;;  %vm2099_vm15 = vcmp.lt.s32.totalorder %v2857_v57, 115 }
 0x40a   : > { %1204 = vrot.lane.b32.xlu0 %v2735_v16, %s2578_s27  ;;  %2520 = vset.pattern.permute.xlu1 %v2579_v59 }
 0x40b   : > { %1731 = vperm.xlu1 %2520, %v1141_v53   ;;  %2524 = vset.pattern.permute.xlu0 %v2571_v1 }
 0x40e   : > { %1167 = vrot.lane.b32.xlu0 %v2735_v16, %s2580_s28 }
 0x40f   : > { %2522 = vset.pattern.permute.xlu1 %v2581_v60 }
 0x410   : > { %1965 = vperm.xlu1 %2522, %v1141_v53  }
 0x412   : > { %1400 = vrot.lane.b32.xlu0 %v2735_v16, %s2582_s29 }
 0x414   : > { %2523 = vset.pattern.permute.xlu1 %v2583_v61 }
 0x415   : > { %2082 = vperm.xlu1 %2523, %v1141_v53  }
 0x416   : > { %1517 = vrot.lane.b32.xlu0 %v2735_v16, %s2584_s20 }
 0x419   : > { %1206 = vrot.lane.b32.xlu1 %v2733_v15, %s2578_s27 }
 0x41a   : > { %1744 = vrot.lane.b32.xlu0 %v2735_v16, %s2585_s21  ;;  %2525 = vset.pattern.permute.xlu1 %v2571_v1  ;;  %v1150_v1 = vshrl.u32 %v1149_v63, 7  ;;  %v2869_v63 = vld [vmem:[%s3042_s16 + $0x8] sm:$0xff] }
 0x41c   : > { %v2825_v2 = vsub.s32 0, %v1150_v1  ;;  %v2827_v3 = vsub.s32 1, %v1150_v1  ;;  %v2833_v12 = vsub.s32 3, %v1150_v1  ;;  %v2835_v13 = vsub.s32 2, %v1150_v1 }
 0x41d   : > { %1169 = vrot.lane.b32.xlu1 %v2733_v15, %s2580_s28  ;;  %v2841_v24 = vsub.s32 6, %v1150_v1  ;;  %v2843_v27 = vsub.s32 4, %v1150_v1  ;;  %v2849_v34 = vsub.s32 5, %v1150_v1  ;;  %v2853_v42 = vsub.s32 7, %v1150_v1 }
 0x41e   : > { %1861 = vrot.lane.b32.xlu0 %v2735_v16, %s2586_s22  ;;  %v1152_v8 = vrot.slane %v2802_v52, %v2825_v2  ;;  %v1189_v9 = vrot.slane %v2802_v52, %v2827_v3  ;;  %v1502_v20 = vrot.slane %v2802_v52, %v2833_v12  ;;  %v1385_v21 = vrot.slane %v2802_v52, %v2835_v13 }
 0x41f   : > { %v1846_v30 = vrot.slane %v2802_v52, %v2841_v24  ;;  %v1619_v31 = vrot.slane %v2802_v52, %v2843_v27  ;;  %v1729_v39 = vrot.slane %v2802_v52, %v2849_v34  ;;  %v1963_v47 = vrot.slane %v2802_v52, %v2853_v42 }
 0x420   : > { %v2080_v59 = vrot.slane %v2800_v51, %v2825_v2 }
 0x421   : > { %1402 = vrot.lane.b32.xlu1 %v2733_v15, %s2582_s29  ;;  %s602_s29 = scalar_lea.vmem %s3045_s19, %s2450_s23 }
 0x422   : > { %1978 = vrot.lane.b32.xlu0 %v2735_v16, %s2587_s2 }
 0x425   : > { %1519 = vrot.lane.b32.xlu1 %v2733_v15, %s2584_s20 }
 0x426   : > { %2095 = vrot.lane.b32.xlu0 %v2735_v16, %s2588_s24 }
 0x429   : > { %1746 = vrot.lane.b32.xlu1 %v2733_v15, %s2585_s21 }
 0x42a   : > { %2197 = vperm.xlu0 %2524, %v2194_v62   ;;  %v2864_v62 = vld [vmem:[%s3042_s16] sm:$0xff] }
 0x42b   : > { %v1214_v51 = vrot.slane %v2864_v62, %v2827_v3 }
 0x42d   : > { %1863 = vrot.lane.b32.xlu1 %v2733_v15, %s2586_s22 }
 0x431   : > { %1980 = vrot.lane.b32.xlu1 %v2733_v15, %s2587_s2 }
 0x435   : > { %2097 = vrot.lane.b32.xlu1 %v2733_v15, %s2588_s24 }
 0x477   : > { %v1156_v10 = vpop.permute.xlu0 %1155  ;;  %v1192_v11 = vpop.permute.xlu1 %1191 }
 0x478   : > { %v1158_v14 = vadd.f32 %v1156_v10, %v1152_v8  ;;  %v1194_v17 = vadd.f32 %v1192_v11, %v1189_v9  ;;  %v1218_v9 = vrot.slane %v2869_v63, %v2827_v3  ;;  %v1183_v3 = vrot.slane %v2869_v63, %v2825_v2 }
 0x47a   : > { %v2398_v18 = vmul.f32 -1.442695, %v1158_v14  ;;  %v2399_v19 = vmul.f32 -1.442695, %v1194_v17 }
 0x47c   : > { %2526 = vpow2.f32 %v2398_v18  ;;  %v1505_v22 = vpop.permute.xlu0 %1504  ;;  %v1388_v23 = vpop.permute.xlu1 %1387 }
 0x47d   : > { %2528 = vpow2.f32 %v2399_v19  ;;  %v1507_v25 = vadd.f32 %v1505_v22, %v1502_v20  ;;  %v1390_v26 = vadd.f32 %v1388_v23, %v1385_v21  ;;  %v1179_v23 = vrot.slane %v2864_v62, %v2825_v2 }
 0x47f   : > { %v2412_v28 = vmul.f32 -1.442695, %v1507_v25  ;;  %v2407_v29 = vmul.f32 -1.442695, %v1390_v26 }
 0x481   : > { %2530 = vpow2.f32 %v2412_v28  ;;  %v1849_v32 = vpop.permute.xlu0 %1848  ;;  %v1622_v33 = vpop.permute.xlu1 %1621 }
 0x482   : > { %2532 = vpow2.f32 %v2407_v29  ;;  %v1851_v35 = vadd.f32 %v1849_v32, %v1846_v30  ;;  %v1624_v36 = vadd.f32 %v1622_v33, %v1619_v31  ;;  %v2400_v30 = vld [vmem:[%s3040_s14 + $0x4] sm:$0xf] }
 0x484   : > { %v2427_v37 = vmul.f32 -1.442695, %v1851_v35  ;;  %v2417_v38 = vmul.f32 -1.442695, %v1624_v36 }
 0x485   : > { %v1205_v40 = vpop.permute.xlu0 %1204 }
 0x486   : > { %v1732_v41 = vpop.permute.xlu1 %1731  ;;  %2534 = vpow2.f32 %v2417_v38  ;;  %v1414_v38 = vrot.slane %v2869_v63, %v2835_v13 }
 0x487   : > { %v1734_v43 = vadd.f32 %v1732_v41, %v1729_v39  ;;  %2536 = vpow2.f32 %v2427_v37  ;;  %v1410_v37 = vrot.slane %v2864_v62, %v2835_v13  ;;  %v1637_v41 = vrot.slane %v2864_v62, %v2843_v27 }
 0x489   : > { %v2527_v44 = vpop.eup %2526  ;;  %v2422_v45 = vmul.f32 -1.442695, %v1734_v43  ;;  %v1168_v53 = vpop.permute.xlu0 %1167 }
 0x48a   : > { %v2529_v46 = vpop.eup %2528  ;;  %v1162_v48 = vadd.f32 1.0, %v2527_v44  ;;  %v1165_v44 = vld [vmem:[%s3040_s14] sm:$0xf] }
 0x48b   : > { %v1198_v49 = vadd.f32 1.0, %v2529_v46  ;;  %2538 = vpow2.f32 %v2422_v45  ;;  %v1966_v50 = vpop.permute.xlu1 %1965  ;;  %v1641_v45 = vrot.slane %v2869_v63, %v2843_v27 }
 0x48c   : > { %v1968_v54 = vadd.f32 %v1966_v50, %v1963_v47 }
 0x48d   : > { %2540 = vrcp.f32 %v1198_v49  ;;  %v1401_v8 = vpop.permute.xlu0 %1400  ;;  %v2408_v49 = vld [vmem:[%s3040_s14 + $0x8] sm:$0xf] }
 0x48e   : > { %v2531_v55 = vpop.eup %2530  ;;  %v2432_v56 = vmul.f32 -1.442695, %v1968_v54  ;;  %2542 = vrcp.f32 %v1162_v48  ;;  %v1527_v48 = vrot.slane %v2864_v62, %v2833_v12 }
 0x48f   : > { %v2533_v58 = vpop.eup %2532  ;;  %v1511_v60 = vadd.f32 1.0, %v2531_v55  ;;  %v1531_v55 = vrot.slane %v2869_v63, %v2833_v12 }
 0x490   : > { %v1394_v61 = vadd.f32 1.0, %v2533_v58  ;;  %2544 = vpow2.f32 %v2432_v56  ;;  %v2083_v52 = vpop.permute.xlu1 %2082 }
 0x491   : > { %v2085_v1 = vadd.f32 %v2083_v52, %v2080_v59  ;;  %v1518_v28 = vpop.permute.xlu0 %1517  ;;  %v1642_v52 = vmul.f32 %v1637_v41, %v2735_v16 }
 0x492   : > { %2546 = vrcp.f32 %v1394_v61  ;;  %v1643_v61 = vmul.f32 %v1641_v45, %v2733_v15  ;;  %v2413_v15 = vld [vmem:[%s3040_s14 + $0xc] sm:$0xf] }
 0x493   : > { %v2437_v10 = vmul.f32 -1.442695, %v2085_v1  ;;  %v2535_v11 = vpop.eup %2534  ;;  %2548 = vrcp.f32 %v1511_v60 }
 0x494   : > { %v1207_v14 = vpop.permute.xlu1 %1206  ;;  %v2537_v17 = vpop.eup %2536  ;;  %v1628_v18 = vadd.f32 1.0, %v2535_v11  ;;  %v1758_v11 = vrot.slane %v2869_v63, %v2849_v34 }
 0x495   : > { %2550 = vpow2.f32 %v2437_v10  ;;  %v1209_v19 = vsel %vm1208_vm7, %v1205_v40, %v1207_v14  ;;  %v1210_v20 = vsel %vm1208_vm7, %v1207_v14, %v1205_v40  ;;  %v1855_v26 = vadd.f32 1.0, %v2537_v17  ;;  %v1745_v27 = vpop.permute.xlu0 %1744  ;;  %v2418_v14 = vld [vmem:[%s3040_s14 + $0x10] sm:$0xf] }
 0x496   : > { %v1219_v21 = vmul.f32 %v1214_v51, %v1210_v20  ;;  %v1220_v22 = vmul.f32 %v1218_v9, %v1209_v19  ;;  %2552 = vrcp.f32 %v1628_v18  ;;  %v1754_v51 = vrot.slane %v2864_v62, %v2849_v34 }
 0x498   : > { %v2539_v25 = vpop.eup %2538  ;;  %2401 = vmatprep.subr.msk.mxu1 %vm1224_vm8, %v1220_v22  ;;  %v1170_v29 = vpop.permute.xlu1 %1169 }
 0x499   : > { %v1738_v31 = vadd.f32 1.0, %v2539_v25  ;;  %v1174_v32 = vsel %vm1173_vm9, %v1168_v53, %v1170_v29  ;;  %v1175_v33 = vsel %vm1173_vm9, %v1170_v29, %v1168_v53  ;;  %2402 = vmatpush1.msk.msra.mxu1 %vm1224_vm8, %v1219_v21  ;;  %v1862_v19 = vpop.permute.xlu0 %1861  ;;  %v2423_v29 = vld [vmem:[%s3040_s14 + $0x14] sm:$0xf] }
 0x49a   : > { %v2541_v2 = vpop.eup %2540  ;;  %v1184_v35 = vmul.f32 %v1179_v23, %v1175_v33  ;;  %v1185_v36 = vmul.f32 %v1183_v3, %v1174_v32 }
 0x49b   : > { %2554 = vrcp.f32 %v1738_v31  ;;  %v1203_v39 = vmul.f32 %v2541_v2, %v2400_v30  ;;  %v2543_v40 = vpop.eup %2542 }
 0x49c   : > { %2556 = vrcp.f32 %v1855_v26  ;;  %2404 = vmatprep.subr.msk.mxu1 %vm1224_vm8, %v1185_v36  ;;  %v1403_v43 = vpop.permute.xlu1 %1402  ;;  %v1166_v58 = vmul.f32 %v2543_v40, %v1165_v44  ;;  %v1871_v26 = vrot.slane %v2864_v62, %v2841_v24  ;;  %v1992_v40 = vrot.slane %v2869_v63, %v2853_v42 }
 0x49d   : > { %v2545_v46 = vpop.eup %2544  ;;  %2403 = vmatmul.mubr.msk.f32.vlgmr.msra.gmra.mxu1 %vm972_vm6, %v1203_v39  ;;  %v1405_v13 = vsel %vm1404_vm10, %v1401_v8, %v1403_v43  ;;  %v1406_v47 = vsel %vm1404_vm10, %v1403_v43, %v1401_v8  ;;  %v1979_v36 = vpop.permute.xlu0 %1978  ;;  %v1988_v39 = vrot.slane %v2864_v62, %v2853_v42  ;;  %v2433_v62 = vld [vmem:[%s3040_s14 + $0x1c] sm:$0xf]  ;;  %v2439_v42 = vld [vmem:[%s3042_s16 + $0x10] ss:$0 sm:$0xff] }
 0x49e   : > { %v1972_v50 = vadd.f32 1.0, %v2545_v46  ;;  %v1415_v53 = vmul.f32 %v1410_v37, %v1406_v47  ;;  %v1416_v54 = vmul.f32 %v1414_v38, %v1405_v13  ;;  %2405 = vmatpush1.msk.msra.mxu1 %vm1224_vm8, %v1184_v35  ;;  %1375 = vmatprep.mubr.f32.mxu1 %v2570_v0  ;;  %v2428_v35 = vld [vmem:[%s3040_s14 + $0x18] sm:$0xf] }
 0x49f   : > { %v2547_v56 = vpop.eup %2546 }
 0x4a0   : > { %2558 = vrcp.f32 %v1972_v50  ;;  %2409 = vmatprep.subr.msk.mxu0 %vm1224_vm8, %v1416_v54  ;;  %v1520_v59 = vpop.permute.xlu1 %1519  ;;  %v1399_v60 = vmul.f32 %v2547_v56, %v2408_v49  ;;  %v2549_v1 = vpop.eup %2548 }
 0x4a1   : > { %2406 = vmatmul.mubr.msk.f32.vlgmr.msra.gmra.mxu1 %vm972_vm6, %v1166_v58  ;;  %v1522_v8 = vsel %vm1521_vm11, %v1518_v28, %v1520_v59  ;;  %v1523_v12 = vsel %vm1521_vm11, %v1520_v59, %v1518_v28  ;;  %2410 = vmatpush1.msk.msra.mxu0 %vm1224_vm8, %v1415_v53  ;;  %v1516_v21 = vmul.f32 %v2549_v1, %v2413_v15  ;;  %v2206_v59 = vld [vmem:[%s3044_s18] sm:$0xff] }
 0x4a2   : > { %v2551_v9 = vpop.eup %2550  ;;  %v1532_v16 = vmul.f32 %v1527_v48, %v1523_v12  ;;  %v1533_v10 = vmul.f32 %v1531_v55, %v1522_v8  ;;  %2411 = vmatmul.mubr.msk.f32.vlgmr.msra.gmra.mxu0 %vm972_vm6, %v1399_v60  ;;  %2419 = vmatprep.subr.msk.mxu0 %vm1224_vm8, %v1643_v61  ;;  %v1875_v28 = vrot.slane %v2869_v63, %v2841_v24  ;;  %v2440_v63 = vld [vmem:[%s3042_s16 + $0x18] ss:$0 sm:$0xff]  ;;  %v2096_v48 = vpop.permute.xlu0 %2095  ;;  %v2207_v60 = vld [vmem:[%s3044_s18 + $0x8] sm:$0xff] }
 0x4a3   : > { %v2089_v17 = vadd.f32 1.0, %v2551_v9  ;;  %2420 = vmatpush1.msk.msra.mxu0 %vm1224_vm8, %v1642_v52  ;;  %1607 = vmatprep.mubr.f32.mxu1 %v2570_v0  ;;  %v2553_v18 = vpop.eup %2552 }
 0x4a4   : > { %2414 = vmatprep.subr.msk.mxu1 %vm1224_vm8, %v1533_v10  ;;  %v1747_v20 = vpop.permute.xlu1 %1746  ;;  %1717 = vmatprep.mubr.f32.mxu0 %v2570_v0  ;;  %v1633_v23 = vmul.f32 %v2553_v18, %v2418_v14 }
 0x4a5   : > { %2560 = vrcp.f32 %v2089_v17  ;;  %v1749_v34 = vsel %vm1748_vm12, %v1745_v27, %v1747_v20  ;;  %v1750_v22 = vsel %vm1748_vm12, %v1747_v20, %v1745_v27  ;;  %2415 = vmatpush1.msk.msra.mxu1 %vm1224_vm8, %v1532_v16  ;;  %v2438_v27 = vld [vmem:[%s3040_s14 + $0x20] sm:$0xf]  ;;  %2210 = vperm.xlu1 %2525, %v2206_v59  }
 0x4a6   : > { %v1759_v3 = vmul.f32 %v1754_v51, %v1749_v34  ;;  %v1760_v25 = vmul.f32 %v1758_v11, %v1750_v22  ;;  %2416 = vmatmul.mubr.msk.f32.vlgmr.msra.gmra.mxu1 %vm972_vm6, %v1516_v21  ;;  %2421 = vmatmul.mubr.msk.f32.vlgmr.msra.gmra.mxu0 %vm972_vm6, %v1633_v23 }
 0x4a7   : > { %1834 = vmatprep.mubr.f32.mxu1 %v2570_v0  ;;  %1951 = vmatprep.mubr.f32.mxu0 %v2570_v0 }
 0x4a8   : > { %v2555_v30 = vpop.eup %2554  ;;  %2424 = vmatprep.subr.msk.mxu1 %vm1224_vm8, %v1760_v25  ;;  %v1864_v31 = vpop.permute.xlu1 %1863 }
 0x4a9   : > { %v2557_v32 = vpop.eup %2556  ;;  %v1866_v33 = vsel %vm1865_vm13, %v1862_v19, %v1864_v31  ;;  %v1867_v24 = vsel %vm1865_vm13, %v1864_v31, %v1862_v19  ;;  %2425 = vmatpush1.msk.msra.mxu1 %vm1224_vm8, %v1759_v3  ;;  %v1743_v2 = vmul.f32 %v2555_v30, %v2423_v29  ;;  %2215 = vperm.xlu1 %2525, %v2207_v60  }
 0x4aa   : > { %v1876_v37 = vmul.f32 %v1871_v26, %v1866_v33  ;;  %v1877_v38 = vmul.f32 %v1875_v28, %v1867_v24  ;;  %v1860_v43 = vmul.f32 %v2557_v32, %v2428_v35 }
 0x4ab   : > { %2426 = vmatmul.mubr.msk.f32.vlgmr.msra.gmra.mxu1 %vm972_vm6, %v1743_v2 }
 0x4ac   : > { %2429 = vmatprep.subr.msk.mxu0 %vm1224_vm8, %v1877_v38  ;;  %v1981_v41 = vpop.permute.xlu1 %1980  ;;  %2068 = vmatprep.mubr.f32.mxu1 %v2570_v0 }
 0x4ad   : > { %v2559_v44 = vpop.eup %2558  ;;  %v1983_v45 = vsel %vm1982_vm14, %v1979_v36, %v1981_v41  ;;  %v1984_v46 = vsel %vm1982_vm14, %v1981_v41, %v1979_v36  ;;  %2430 = vmatpush1.msk.msra.mxu0 %vm1224_vm8, %v1876_v37  ;;  %v2198_v36 = vpop.permute.xlu0 %2197 }
 0x4ae   : > { %v1993_v13 = vmul.f32 %v1988_v39, %v1983_v45  ;;  %v1994_v47 = vmul.f32 %v1992_v40, %v1984_v46  ;;  %2431 = vmatmul.mubr.msk.f32.vlgmr.msra.gmra.mxu0 %vm972_vm6, %v1860_v43  ;;  %v1977_v50 = vmul.f32 %v2559_v44, %v2433_v62  ;;  %v2204_v44 = vld [vmem:[%s3043_s17] sm:$0xff]  ;;  %v2205_v45 = vld [vmem:[%s3043_s17 + $0x8] sm:$0xff] }
 0x4af   : > { %2185 = vmatprep.mubr.f32.mxu0 %v2570_v0 }
 0x4b0   : > { %2434 = vmatprep.subr.msk.mxu1 %vm1224_vm8, %v1994_v47  ;;  %v2098_v49 = vpop.permute.xlu1 %2097 }
 0x4b1   : > { %v2100_v57 = vsel %vm2099_vm15, %v2096_v48, %v2098_v49  ;;  %v2101_v53 = vsel %vm2099_vm15, %v2098_v49, %v2096_v48  ;;  %2435 = vmatpush1.msk.msra.mxu1 %vm1224_vm8, %v1993_v13 }
 0x4b2   : > { %v2561_v54 = vpop.eup %2560  ;;  %v2110_v55 = vmul.f32 %v2439_v42, %v2100_v57  ;;  %v2111_v56 = vmul.f32 %v2440_v63, %v2101_v53  ;;  %2436 = vmatmul.mubr.msk.f32.vlgmr.msra.gmra.mxu1 %vm972_vm6, %v1977_v50 }
 0x4b3   : > { %v2094_v58 = vmul.f32 %v2561_v54, %v2438_v27  ;;  %2294 = vmatprep.mubr.f32.mxu1 %v2570_v0 }
 0x4b4   : > { %2441 = vmatprep.subr.msk.mxu0 %vm1224_vm8, %v2111_v56 }
 0x4b5   : > { %2442 = vmatpush1.msk.msra.mxu0 %vm1224_vm8, %v2110_v55 }
 0x4b6   : > { %2443 = vmatmul.mubr.msk.f32.vlgmr.msra.gmra.mxu0 %vm972_vm6, %v2094_v58 }
 0x520   : > { %v2211_v46 = vpop.permute.xlu1 %2210 }
 0x55d   : > { %v1297_v61 = vpop.f32.mrf.mxu1 }
 0x55f   : > { %v1299_v52 = vpop.f32.mrf.mxu1 }
 0x561   : > { %v1377_v1 = vpop.f32.mrf.mxu1 }
 0x562   : > { %v1378_v8 = vadd.f32 %v1377_v1, %v1297_v61  ;;  %v1492_v12 = vpop.f32.mrf.mxu0 }
 0x563   : > { %v1379_v51 = vpop.f32.mrf.mxu1 }
 0x564   : > { %v1380_v15 = vadd.f32 %v1379_v51, %v1299_v52  ;;  %v1494_v9 = vpop.f32.mrf.mxu0  ;;  %v1497_v16 = vadd.f32 %v1492_v12, %v1378_v8 }
 0x566   : > { %v1609_v10 = vpop.f32.mrf.mxu1  ;;  %v1498_v11 = vadd.f32 %v1494_v9, %v1380_v15  ;;  %v1719_v17 = vpop.f32.mrf.mxu0 }
 0x567   : > { %v1614_v14 = vadd.f32 %v1609_v10, %v1497_v16 }
 0x568   : > { %v1611_v18 = vpop.f32.mrf.mxu1  ;;  %v1721_v34 = vpop.f32.mrf.mxu0 }
 0x569   : > { %v1615_v19 = vadd.f32 %v1611_v18, %v1498_v11  ;;  %v1724_v20 = vadd.f32 %v1719_v17, %v1614_v14 }
 0x56b   : > { %v1836_v21 = vpop.f32.mrf.mxu1  ;;  %v1725_v22 = vadd.f32 %v1721_v34, %v1615_v19 }
 0x56c   : > { %v1841_v25 = vadd.f32 %v1836_v21, %v1724_v20 }
 0x56d   : > { %v1838_v23 = vpop.f32.mrf.mxu1 }
 0x56e   : > { %v1953_v3 = vpop.f32.mrf.mxu0  ;;  %v1842_v26 = vadd.f32 %v1838_v23, %v1725_v22 }
 0x56f   : > { %v1958_v30 = vadd.f32 %v1953_v3, %v1841_v25 }
 0x570   : > { %v1955_v28 = vpop.f32.mrf.mxu0 }
 0x571   : > { %v1959_v32 = vadd.f32 %v1955_v28, %v1842_v26 }
 0x572   : > { %v2070_v29 = vpop.f32.mrf.mxu1 }
 0x573   : > { %v2075_v33 = vadd.f32 %v2070_v29, %v1958_v30 }
 0x574   : > { %v2072_v31 = vpop.f32.mrf.mxu1 }
 0x575   : > { %v2076_v2 = vadd.f32 %v2072_v31, %v1959_v32 }
 0x576   : > { %v2187_v24 = vpop.f32.mrf.mxu0 }
 0x577   : > { %v2192_v35 = vadd.f32 %v2187_v24, %v2075_v33 }
 0x578   : > { %v2189_v37 = vpop.f32.mrf.mxu0 }
 0x579   : > { %v2193_v38 = vadd.f32 %v2189_v37, %v2076_v2  ;;  %v2200_v39 = vadd.f32 %v2198_v36, %v2192_v35 }
 0x57b   : > { %v2201_v40 = vadd.f32 %v2198_v36, %v2193_v38  ;;  %v2202_v43 = vmax.f32 %v2200_v39, 0.0 }
 0x57d   : > { %v2203_v41 = vmax.f32 %v2201_v40, 0.0 }
 0x57f   : > { %2444 = vmatprep.subr.msk.mxu1 %vm1224_vm8, %v2203_v41 }
 0x580   : > { %2445 = vmatpush1.msk.msra.mxu1 %vm1224_vm8, %v2202_v43 }
 0x581   : > { %2446 = vmatmul.mubr.msk.f32.vlgmr.msra.gmra.mxu1 %vm972_vm6, %v2204_v44 }
 0x582   : > { %2300 = vmatprep.mubr.f32.mxu1 %v2570_v0  ;;  %v2216_v0 = vpop.permute.xlu1 %2215 }
 0x585   : > { %2447 = vmatmul.mubr.msk.f32.gmra.mxu1 %vm972_vm6, %v2205_v45 }
 0x641   : > { %v2296_v62 = vpop.f32.mrf.mxu1 }
 0x642   : > { %v2297_v13 = vadd.f32 %v2296_v62, %v2211_v46 }
 0x643   : > { %v2298_v47 = vpop.f32.mrf.mxu1 }
 0x644   : > { %v2307_v42 = vadd.f32 %v2297_v13, %v2721_v7  ;;  %v2299_v63 = vadd.f32 %v2298_v47, %v2211_v46 }
 0x645   : > { %v2302_v48 = vpop.f32.mrf.mxu1 }
 0x646   : > { %v2311_v49 = vmax.f32 %v2307_v42, 0.0  ;;  %v2308_v50 = vadd.f32 %v2299_v63, %v2718_v6  ;;  %v2303_v27 = vadd.f32 %v2302_v48, %v2216_v0 }
 0x647   : > { %v2304_v57 = vpop.f32.mrf.mxu1 }
 0x648   : > { %2315 = vst [vmem:[%s602_s29] sm:$0xff] %v2311_v49  ;;  %v2312_v53 = vmax.f32 %v2308_v50, 0.0  ;;  %v2309_v54 = vadd.f32 %v2303_v27, %v2716_v5  ;;  %v2305_v55 = vadd.f32 %v2304_v57, %v2216_v0 }
 0x64a   : > { %2316 = vst [vmem:[%s602_s29 + $0x8] sm:$0xff] %v2312_v53  ;;  %v2313_v7 = vmax.f32 %v2309_v54, 0.0  ;;  %v2310_v56 = vadd.f32 %v2305_v55, %v2714_v4 }
 0x64c   : > { %2317 = vst [vmem:[%s602_s29 + $0x10] sm:$0xff] %v2313_v7  ;;  %v2314_v58 = vmax.f32 %v2310_v56, 0.0 }
 0x64e   : > { %2318 = vst [vmem:[%s602_s29 + $0x18] sm:$0xff] %v2314_v58 }
 0x64f PF: > { %s29_s0 = sadd.s32 1, %s2568_s0  }
 0x650   : > { %p26_p4 = scmp.ge.s32.totalorder %s29_s0, 4  }
 0x652   :  { %28 = sbr.rel (!%p26_p4) target bundleno = 5 (0x5), region = 134 }

</bundles_post_ra>
